<compile_context>
chip_gen: v7x
topology: tpu7x:2x2x1
jax: 0.10.0
libtpu: 0.0.40
codegen_flags: <defaults>
</compile_context>

<pallas_src>
import math

import jax
import jax.numpy as jnp
import numpy as np
from jax import lax
from jax.experimental import pallas as pl
from jax.experimental.pallas import tpu as pltpu


_TRANS_A = (((0,), (0,)), ((), ()))   # contract lhs axis0 with rhs axis0
_TRANS_B = (((1,), (1,)), ((), ()))   # contract lhs axis1 with rhs axis1


# ----------------------------- in-kernel helpers ----------------------------

def _attn_core(q, k, v):
    """q, k, v: (P, N) f32; the 1/sqrt(P) scale is pre-folded into q.

    Returns softmax(q^T k) applied to v, shape (P, N), f32.
      * no materialized transposes (dot_general dimension_numbers),
      * softmax normalization deferred: numerator (v @ p^T) and the (1, N)
        row-sum denominator (ones-row @ p^T) are separate MXU matmuls and the
        divide is an EUP approximate reciprocal,
      * p (and v) cast to bf16 for the contraction-N matmuls (native MXU
        rate, half the vreg footprint); accumulation stays f32.
    """
    # scores[n, m] = sum_p q[p, n] * k[p, m]
    scores = lax.dot_general(q, k, _TRANS_A,
                             preferred_element_type=jnp.float32)     # (N, N)
    m = jnp.max(scores, axis=-1, keepdims=True)                      # (N, 1)
    p = jnp.exp(scores - m).astype(jnp.bfloat16)                     # (N, N)
    ones_row = jnp.ones((1, p.shape[1]), jnp.bfloat16)
    denom = lax.dot_general(ones_row, p, _TRANS_B,
                            preferred_element_type=jnp.float32)      # (1, N)
    # out[c, n] = sum_m v[c, m] * p[n, m]
    out = lax.dot_general(v.astype(jnp.bfloat16), p, _TRANS_B,
                          preferred_element_type=jnp.float32)        # (P, N)
    # Deferred normalization: EUP vrcp + O(P*N) multiply (no divide chain).
    return out * pl.reciprocal(denom, approx=True)


# ------------------------------- Pallas kernel -------------------------------

def _make_sa_block_kernel(P, N, Np, n_win, pack):
    """Fused SABasicBlock forward for one batch element (fully VMEM-resident).

    Kernel refs:
      w1_ref  : (6P, Cin)  rows = [wq1*s, wk1, wv1, wqd*s, wkd, wvd(perm)]
      w2_ref  : (3P, P)    rows = [wq2*s, wk2, wv2(perm)]
      pool_ref: (N, (1+n_win)*Np)  [AvgPool2d matrix | one-hot window members]
      x_ref   : (1, Cin, N)
      o_ref   : (1, P//pack, pack*Np)  lane-dense packed output
      cat_ref : (2P, N) f32 scratch (stacked pooling LHS, reused for packing)
    """
    Pp = P // pack

    def kernel(w1_ref, w2_ref, pool_ref, x_ref, o_ref, cat_ref):
        # ---- stacked q/k/v projections for sa1 and the downsample SA -------
        x = x_ref[0].astype(jnp.float32)                              # (Cin, N)
        qkv = jnp.dot(w1_ref[...].astype(jnp.float32), x,
                      preferred_element_type=jnp.float32)             # (6P, N)
        # P = 8 keeps every slice on an f32 sublane-tile boundary.
        out1 = _attn_core(qkv[0 * P:1 * P], qkv[1 * P:2 * P],
                          qkv[2 * P:3 * P])                           # sa1(x)
        outd = _attn_core(qkv[3 * P:4 * P], qkv[4 * P:5 * P],
                          qkv[5 * P:6 * P])                           # downsample SA(x)

        # ---- AvgPool2d + MaxPool2d window gather: one stacked MXU matmul ---
        # pool cols [0:Np)           : AvgPool2d(stride) matrix
        # pool cols [(1+i)Np:(2+i)Np): one-hot selector of window member i
        cat_ref[0:P, :] = out1
        cat_ref[P:2 * P, :] = outd
        pooled = jnp.dot(cat_ref[...], pool_ref[...].astype(jnp.float32),
                         preferred_element_type=jnp.float32)          # (2P, (1+n_win)Np)

        x1 = jnp.maximum(pooled[0:P, 0:Np], 0.0)                      # act(pool(sa1(x)))
        ds = pooled[P:2 * P, Np:2 * Np]                               # MaxPool2d over the
        for i in range(2, 1 + n_win):                                 # s*s window members
            ds = jnp.maximum(ds, pooled[P:2 * P, i * Np:(i + 1) * Np])

        # ---- sa2 + ReLU + residual add + final ReLU ------------------------
        qkv2 = jnp.dot(w2_ref[...].astype(jnp.float32), x1,
                       preferred_element_type=jnp.float32)            # (3P, Np)
        out2 = jnp.maximum(
            _attn_core(qkv2[0 * P:1 * P], qkv2[1 * P:2 * P],
                       qkv2[2 * P:3 * P]), 0.0)                       # act(sa2(.))
        res = jnp.maximum(out2 + ds, 0.0)                             # act(. + downsample)

        # ---- lane-dense packed store ----------------------------------------
        # `res` rows are already in the host-permuted channel order, so packing
        # `pack` channels side by side yields full 128-lane output rows; the
        # wrapper's un-pack is a free contiguous reshape.
        cat_ref[0:P, 0:Np] = res          # reuse scratch (its pooling use is dead)
        for j in range(pack):
            o_ref[0, :, j * Np:(j + 1) * Np] = (
                cat_ref[j * Pp:(j + 1) * Pp, 0:Np].astype(o_ref.dtype))

    return kernel


# ------------------------------ plain-JAX glue --------------------------------

def _pool_matrices(H, W, s):
    """(N, (1+s*s)*Np): AvgPool2d(s) matrix followed by the s*s one-hot
    MaxPool2d window-member selectors, on flattened H*W positions."""
    Hp, Wp = H // s, W // s
    N, Np = H * W, Hp * Wp
    mats = np.zeros((1 + s * s, N, Np), np.float32)
    for h in range(H):
        for w in range(W):
            n = h * W + w
            j = (h // s) * Wp + (w // s)
            mats[0, n, j] = 1.0 / float(s * s)            # average pool
            mats[1 + (h % s) * s + (w % s), n, j] = 1.0   # window member (dy,dx)
    return jnp.asarray(np.concatenate(list(mats), axis=1))


def sa_basic_block_forward(x_nchw, params, stride):
    """Pallas implementation of SABasicBlock.forward (in_planes != planes)."""
    B, Cin, H, W = x_nchw.shape
    P = params["sa1"][0].shape[0]
    N = H * W
    Hp, Wp = H // stride, W // stride
    Np = Hp * Wp
    n_win = stride * stride
    scale = 1.0 / math.sqrt(float(P))

    # Lane-dense output packing factor: put `pack` channels side by side on
    # the lane axis so the per-step HBM-facing store reaches 128 lanes.
    pack = 1
    if Np < 128 and 128 % Np == 0 and P % (128 // Np) == 0:
        pack = 128 // Np
    Pp = P // pack
    # perm[j*Pp + r] = r*pack + j  ->  packed rows un-pack to the original
    # channel order with a plain contiguous reshape.
    perm = np.array([r * pack + j for j in range(pack) for r in range(Pp)],
                    dtype=np.int32)

    wq1, wk1, wv1 = params["sa1"]
    wq2, wk2, wv2 = params["sa2"]
    wqd, wkd, wvd = params["sad"]
    # Fold the 1/sqrt(P) score scale into the q projections; stack every
    # projection that consumes the same input into one weight matrix; apply
    # the output packing permutation to the v rows of sa2 / downsample-SA
    # (their rows are the block's output channels).
    w1 = jnp.concatenate([wq1 * scale, wk1, wv1,
                          wqd * scale, wkd, wvd[perm]], axis=0)        # (6P, Cin)
    w2 = jnp.concatenate([wq2 * scale, wk2, wv2[perm]], axis=0)        # (3P, P)
    pool_mat = _pool_matrices(H, W, stride)                            # (N, (1+s^2)Np)

    x_seq = x_nchw.reshape(B, Cin, N)
    kernel = _make_sa_block_kernel(P, N, Np, n_win, pack)

    # One fused kernel: sa1 + downsample-SA + avg/max pooling + sa2 + ReLUs +
    # residual add, all per batch element, VMEM-resident end to end.
    # (bn1 / bn2 results are discarded in the reference forward.)
    out_packed = pl.pallas_call(
        kernel,
        out_shape=jax.ShapeDtypeStruct((B, Pp, pack * Np), x_nchw.dtype),
        grid_spec=pltpu.PrefetchScalarGridSpec(
            num_scalar_prefetch=0,
            grid=(B,),
            in_specs=[
                pl.BlockSpec((6 * P, Cin), lambda b: (0, 0)),
                pl.BlockSpec((3 * P, P), lambda b: (0, 0)),
                pl.BlockSpec((N, (1 + n_win) * Np), lambda b: (0, 0)),
                pl.BlockSpec((1, Cin, N), lambda b: (b, 0, 0)),
            ],
            out_specs=pl.BlockSpec((1, Pp, pack * Np), lambda b: (b, 0, 0)),
            scratch_shapes=[pltpu.VMEM((2 * P, N), jnp.float32)],
        ),
        compiler_params=pltpu.CompilerParams(
            # One batch element per grid step; "parallel" lets v7x's two
            # TensorCores split the batch.  TODO(synk): add a second parallel
            # axis (e.g. over the two stage-1 attention heads) if B == 1.
            dimension_semantics=("parallel",),
            vmem_limit_bytes=32 * 1024 * 1024,
        ),
    )(w1, w2, pool_mat, x_seq)

    # Free contiguous reshape: (B, P/pack, pack*Np) -> (B, P, Hp, Wp).
    return out_packed.reshape(B, P, Hp, Wp)


# ---------------------------- pure-JAX reference ------------------------------

def _avg_pool(x_nchw, s):
    if s == 1:
        return x_nchw
    B, C, H, W = x_nchw.shape
    return x_nchw.reshape(B, C, H // s, s, W // s, s).mean(axis=(3, 5))


def _max_pool(x_nchw, s):
    if s == 1:
        return x_nchw
    B, C, H, W = x_nchw.shape
    return x_nchw.reshape(B, C, H // s, s, W // s, s).max(axis=(3, 5))


def _sa_ref(x_seq, wq, wk, wv):
    P = wq.shape[0]
    q = jnp.einsum("pc,bcn->bpn", wq, x_seq)
    k = jnp.einsum("pc,bcn->bpn", wk, x_seq)
    v = jnp.einsum("pc,bcn->bpn", wv, x_seq)
    s = jnp.einsum("bpn,bpm->bnm", q, k) / math.sqrt(float(P))
    attn = jax.nn.softmax(s, axis=-1)
    return jnp.einsum("bpm,bnm->bpn", v, attn)


def sa_basic_block_ref(x_nchw, params, stride):
    B, Cin, H, W = x_nchw.shape
    P = params["sa1"][0].shape[0]
    x_seq = x_nchw.reshape(B, Cin, H * W)
    x1 = _sa_ref(x_seq, *params["sa1"]).reshape(B, P, H, W)
    x1 = _avg_pool(x1, stride)
    Hp, Wp = x1.shape[2], x1.shape[3]
    x1 = jnp.maximum(x1.reshape(B, P, Hp * Wp), 0.0)
    x2 = jnp.maximum(_sa_ref(x1, *params["sa2"]), 0.0)
    ds = _sa_ref(x_seq, *params["sad"]).reshape(B, P, H, W)
    ds = _max_pool(ds, stride).reshape(B, P, Hp * Wp)
    return jnp.maximum(x2 + ds, 0.0).reshape(B, P, Hp, Wp)


# ----------------------------------- main --------------------------------------

if __name__ == "__main__":
    B, IN_PLANES, PLANES, H, W, STRIDE = 2, 4, 8, 16, 16, 2

    key = jax.random.PRNGKey(0)
    keys = jax.random.split(key, 10)

    def w(k, shape):
        return 0.1 * jax.random.normal(k, shape, dtype=jnp.float32)

    params = {
        "sa1": (w(keys[0], (PLANES, IN_PLANES)),
                w(keys[1], (PLANES, IN_PLANES)),
                w(keys[2], (PLANES, IN_PLANES))),
        "sa2": (w(keys[3], (PLANES, PLANES)),
                w(keys[4], (PLANES, PLANES)),
                w(keys[5], (PLANES, PLANES))),
        "sad": (w(keys[6], (PLANES, IN_PLANES)),
                w(keys[7], (PLANES, IN_PLANES)),
                w(keys[8], (PLANES, IN_PLANES))),
    }

    x = jax.random.normal(keys[9], (B, IN_PLANES, H, W), dtype=jnp.float32)

    out = sa_basic_block_forward(x, params, STRIDE)
    out = jax.block_until_ready(out)

    ref = jax.block_until_ready(sa_basic_block_ref(x, params, STRIDE))
    np.testing.assert_allclose(np.asarray(out), np.asarray(ref),
                               rtol=1e-3, atol=1e-3)

    assert out.shape == (B, PLANES, H // STRIDE, W // STRIDE)
    print("KERNEL_OK")
</pallas_src>

<mosaic_0001>
module attributes {stable_mosaic.version = 11 : i64} {
  func.func @kernel(%arg0: i32, %arg1: memref<48x4xf32, #tpu.memory_space<vmem>>, %arg2: memref<24x8xf32, #tpu.memory_space<vmem>>, %arg3: memref<256x320xf32, #tpu.memory_space<vmem>>, %arg4: memref<1x4x256xf32, #tpu.memory_space<vmem>>, %arg5: memref<1x4x128xf32, #tpu.memory_space<vmem>>, %arg6: memref<16x256xf32, #tpu.memory_space<vmem>>) attributes {dimension_semantics = [#tpu.dimension_semantics<parallel>], iteration_bounds = array<i64: 2>, scalar_prefetch = 0 : i64, scratch_operands = 1 : i64, tpu.core_type = #tpu.core_type<tc>, window_params = [{pipeline_mode = #tpu.pipeline_mode<synchronous>, transform_indices = @transform_0, window_bounds = array<i64: 48, 4>}, {pipeline_mode = #tpu.pipeline_mode<synchronous>, transform_indices = @transform_1, window_bounds = array<i64: 24, 8>}, {pipeline_mode = #tpu.pipeline_mode<synchronous>, transform_indices = @transform_2, window_bounds = array<i64: 256, 320>}, {transform_indices = @transform_3, window_bounds = array<i64: 1, 4, 256>}, {transform_indices = @transform_4, window_bounds = array<i64: 1, 4, 128>}]} {
    %c0 = arith.constant 0 : index
    %c0_0 = arith.constant 0 : index
    %c0_1 = arith.constant 0 : index
    %0 = vector.load %arg4[%c0, %c0_0, %c0_1] : memref<1x4x256xf32, #tpu.memory_space<vmem>>, vector<1x4x256xf32>
    %1 = vector.shape_cast %0 : vector<1x4x256xf32> to vector<4x256xf32>
    %c0_2 = arith.constant 0 : index
    %c0_3 = arith.constant 0 : index
    %2 = vector.load %arg1[%c0_2, %c0_3] : memref<48x4xf32, #tpu.memory_space<vmem>>, vector<48x4xf32>
    %cst = arith.constant dense<0.000000e+00> : vector<48x256xf32>
    %3 = tpu.matmul %2, %1, %cst {dimension_numbers = #tpu.dot_dimension_numbers<[1], [0], [0], [1], [0, 0, 1, 1], [], []>} : vector<48x4xf32>, vector<4x256xf32>, vector<48x256xf32> -> vector<48x256xf32>
    %4 = vector.extract_strided_slice %3 {offsets = [0, 0], sizes = [8, 256], strides = [1, 1]} : vector<48x256xf32> to vector<8x256xf32>
    %5 = vector.extract_strided_slice %3 {offsets = [8, 0], sizes = [8, 256], strides = [1, 1]} : vector<48x256xf32> to vector<8x256xf32>
    %6 = vector.extract_strided_slice %3 {offsets = [16, 0], sizes = [8, 256], strides = [1, 1]} : vector<48x256xf32> to vector<8x256xf32>
    %cst_4 = arith.constant dense<0.000000e+00> : vector<256x256xf32>
    %7 = tpu.matmul %4, %5, %cst_4 {dimension_numbers = #tpu.dot_dimension_numbers<[0], [0], [1], [1], [0, 1, 1, 1], [], []>} : vector<8x256xf32>, vector<8x256xf32>, vector<256x256xf32> -> vector<256x256xf32>
    %cst_5 = arith.constant dense<0xFF800000> : vector<256xf32>
    %8 = vector.multi_reduction <maximumf>, %7, %cst_5 [1] : vector<256x256xf32> to vector<256xf32>
    %9 = vector.shape_cast %8 : vector<256xf32> to vector<256x1xf32>
    %10 = vector.broadcast %9 : vector<256x1xf32> to vector<256x256xf32>
    %11 = arith.subf %7, %10 : vector<256x256xf32>
    %12 = math.exp %11 : vector<256x256xf32>
    %13 = arith.truncf %12 : vector<256x256xf32> to vector<256x256xbf16>
    %cst_6 = arith.constant 1.000000e+00 : bf16
    %14 = vector.broadcast %cst_6 : bf16 to vector<1x256xbf16>
    %cst_7 = arith.constant dense<0.000000e+00> : vector<1x256xf32>
    %15 = tpu.matmul %14, %13, %cst_7 {dimension_numbers = #tpu.dot_dimension_numbers<[1], [1], [0], [0], [0, 0, 1, 0], [], []>} : vector<1x256xbf16>, vector<256x256xbf16>, vector<1x256xf32> -> vector<1x256xf32>
    %16 = arith.truncf %6 : vector<8x256xf32> to vector<8x256xbf16>
    %cst_8 = arith.constant dense<0.000000e+00> : vector<8x256xf32>
    %17 = tpu.matmul %16, %13, %cst_8 {dimension_numbers = #tpu.dot_dimension_numbers<[1], [1], [0], [0], [0, 0, 1, 0], [], []>} : vector<8x256xbf16>, vector<256x256xbf16>, vector<8x256xf32> -> vector<8x256xf32>
    %18 = tpu.reciprocal %15 {approx = true} : vector<1x256xf32> -> vector<1x256xf32>
    %19 = vector.broadcast %18 : vector<1x256xf32> to vector<8x256xf32>
    %20 = arith.mulf %17, %19 : vector<8x256xf32>
    %21 = vector.extract_strided_slice %3 {offsets = [24, 0], sizes = [8, 256], strides = [1, 1]} : vector<48x256xf32> to vector<8x256xf32>
    %22 = vector.extract_strided_slice %3 {offsets = [32, 0], sizes = [8, 256], strides = [1, 1]} : vector<48x256xf32> to vector<8x256xf32>
    %23 = vector.extract_strided_slice %3 {offsets = [40, 0], sizes = [8, 256], strides = [1, 1]} : vector<48x256xf32> to vector<8x256xf32>
    %cst_9 = arith.constant dense<0.000000e+00> : vector<256x256xf32>
    %24 = tpu.matmul %21, %22, %cst_9 {dimension_numbers = #tpu.dot_dimension_numbers<[0], [0], [1], [1], [0, 1, 1, 1], [], []>} : vector<8x256xf32>, vector<8x256xf32>, vector<256x256xf32> -> vector<256x256xf32>
    %cst_10 = arith.constant dense<0xFF800000> : vector<256xf32>
    %25 = vector.multi_reduction <maximumf>, %24, %cst_10 [1] : vector<256x256xf32> to vector<256xf32>
    %26 = vector.shape_cast %25 : vector<256xf32> to vector<256x1xf32>
    %27 = vector.broadcast %26 : vector<256x1xf32> to vector<256x256xf32>
    %28 = arith.subf %24, %27 : vector<256x256xf32>
    %29 = math.exp %28 : vector<256x256xf32>
    %30 = arith.truncf %29 : vector<256x256xf32> to vector<256x256xbf16>
    %cst_11 = arith.constant 1.000000e+00 : bf16
    %31 = vector.broadcast %cst_11 : bf16 to vector<1x256xbf16>
    %cst_12 = arith.constant dense<0.000000e+00> : vector<1x256xf32>
    %32 = tpu.matmul %31, %30, %cst_12 {dimension_numbers = #tpu.dot_dimension_numbers<[1], [1], [0], [0], [0, 0, 1, 0], [], []>} : vector<1x256xbf16>, vector<256x256xbf16>, vector<1x256xf32> -> vector<1x256xf32>
    %33 = arith.truncf %23 : vector<8x256xf32> to vector<8x256xbf16>
    %cst_13 = arith.constant dense<0.000000e+00> : vector<8x256xf32>
    %34 = tpu.matmul %33, %30, %cst_13 {dimension_numbers = #tpu.dot_dimension_numbers<[1], [1], [0], [0], [0, 0, 1, 0], [], []>} : vector<8x256xbf16>, vector<256x256xbf16>, vector<8x256xf32> -> vector<8x256xf32>
    %35 = tpu.reciprocal %32 {approx = true} : vector<1x256xf32> -> vector<1x256xf32>
    %36 = vector.broadcast %35 : vector<1x256xf32> to vector<8x256xf32>
    %37 = arith.mulf %34, %36 : vector<8x256xf32>
    %c0_14 = arith.constant 0 : index
    %c0_15 = arith.constant 0 : index
    %38 = vector.load %arg6[%c0_14, %c0_15] : memref<16x256xf32, #tpu.memory_space<vmem>>, vector<8x256xf32>
    tpu.vector_store %arg6[%c0_14, %c0_15], %20 {strides = array<i32>} : memref<16x256xf32, #tpu.memory_space<vmem>>, vector<8x256xf32>,
    %c8 = arith.constant 8 : index
    %c0_16 = arith.constant 0 : index
    %39 = vector.load %arg6[%c8, %c0_16] : memref<16x256xf32, #tpu.memory_space<vmem>>, vector<8x256xf32>
    tpu.vector_store %arg6[%c8, %c0_16], %37 {strides = array<i32>} : memref<16x256xf32, #tpu.memory_space<vmem>>, vector<8x256xf32>,
    %c0_17 = arith.constant 0 : index
    %c0_18 = arith.constant 0 : index
    %40 = vector.load %arg6[%c0_17, %c0_18] : memref<16x256xf32, #tpu.memory_space<vmem>>, vector<16x256xf32>
    %c0_19 = arith.constant 0 : index
    %c0_20 = arith.constant 0 : index
    %41 = vector.load %arg3[%c0_19, %c0_20] : memref<256x320xf32, #tpu.memory_space<vmem>>, vector<256x320xf32>
    %cst_21 = arith.constant dense<0.000000e+00> : vector<16x320xf32>
    %42 = tpu.matmul %40, %41, %cst_21 {dimension_numbers = #tpu.dot_dimension_numbers<[1], [0], [0], [1], [0, 0, 1, 1], [], []>} : vector<16x256xf32>, vector<256x320xf32>, vector<16x320xf32> -> vector<16x320xf32>
    %43 = vector.extract_strided_slice %42 {offsets = [0, 0], sizes = [8, 64], strides = [1, 1]} : vector<16x320xf32> to vector<8x64xf32>
    %cst_22 = arith.constant 0.000000e+00 : f32
    %44 = vector.broadcast %cst_22 : f32 to vector<8x64xf32>
    %45 = arith.maximumf %43, %44 : vector<8x64xf32>
    %46 = vector.extract_strided_slice %42 {offsets = [8, 64], sizes = [8, 64], strides = [1, 1]} : vector<16x320xf32> to vector<8x64xf32>
    %47 = vector.extract_strided_slice %42 {offsets = [8, 128], sizes = [8, 64], strides = [1, 1]} : vector<16x320xf32> to vector<8x64xf32>
    %48 = arith.maximumf %46, %47 : vector<8x64xf32>
    %49 = vector.extract_strided_slice %42 {offsets = [8, 192], sizes = [8, 64], strides = [1, 1]} : vector<16x320xf32> to vector<8x64xf32>
    %50 = arith.maximumf %48, %49 : vector<8x64xf32>
    %51 = vector.extract_strided_slice %42 {offsets = [8, 256], sizes = [8, 64], strides = [1, 1]} : vector<16x320xf32> to vector<8x64xf32>
    %52 = arith.maximumf %50, %51 : vector<8x64xf32>
    %c0_23 = arith.constant 0 : index
    %c0_24 = arith.constant 0 : index
    %53 = vector.load %arg2[%c0_23, %c0_24] : memref<24x8xf32, #tpu.memory_space<vmem>>, vector<24x8xf32>
    %cst_25 = arith.constant dense<0.000000e+00> : vector<24x64xf32>
    %54 = tpu.matmul %53, %45, %cst_25 {dimension_numbers = #tpu.dot_dimension_numbers<[1], [0], [0], [1], [0, 0, 1, 1], [], []>} : vector<24x8xf32>, vector<8x64xf32>, vector<24x64xf32> -> vector<24x64xf32>
    %55 = vector.extract_strided_slice %54 {offsets = [0, 0], sizes = [8, 64], strides = [1, 1]} : vector<24x64xf32> to vector<8x64xf32>
    %56 = vector.extract_strided_slice %54 {offsets = [8, 0], sizes = [8, 64], strides = [1, 1]} : vector<24x64xf32> to vector<8x64xf32>
    %57 = vector.extract_strided_slice %54 {offsets = [16, 0], sizes = [8, 64], strides = [1, 1]} : vector<24x64xf32> to vector<8x64xf32>
    %cst_26 = arith.constant dense<0.000000e+00> : vector<64x64xf32>
    %58 = tpu.matmul %55, %56, %cst_26 {dimension_numbers = #tpu.dot_dimension_numbers<[0], [0], [1], [1], [0, 1, 1, 1], [], []>} : vector<8x64xf32>, vector<8x64xf32>, vector<64x64xf32> -> vector<64x64xf32>
    %cst_27 = arith.constant dense<0xFF800000> : vector<64xf32>
    %59 = vector.multi_reduction <maximumf>, %58, %cst_27 [1] : vector<64x64xf32> to vector<64xf32>
    %60 = vector.shape_cast %59 : vector<64xf32> to vector<64x1xf32>
    %61 = vector.broadcast %60 : vector<64x1xf32> to vector<64x64xf32>
    %62 = arith.subf %58, %61 : vector<64x64xf32>
    %63 = math.exp %62 : vector<64x64xf32>
    %64 = arith.truncf %63 : vector<64x64xf32> to vector<64x64xbf16>
    %cst_28 = arith.constant 1.000000e+00 : bf16
    %65 = vector.broadcast %cst_28 : bf16 to vector<1x64xbf16>
    %cst_29 = arith.constant dense<0.000000e+00> : vector<1x64xf32>
    %66 = tpu.matmul %65, %64, %cst_29 {dimension_numbers = #tpu.dot_dimension_numbers<[1], [1], [0], [0], [0, 0, 1, 0], [], []>} : vector<1x64xbf16>, vector<64x64xbf16>, vector<1x64xf32> -> vector<1x64xf32>
    %67 = arith.truncf %57 : vector<8x64xf32> to vector<8x64xbf16>
    %cst_30 = arith.constant dense<0.000000e+00> : vector<8x64xf32>
    %68 = tpu.matmul %67, %64, %cst_30 {dimension_numbers = #tpu.dot_dimension_numbers<[1], [1], [0], [0], [0, 0, 1, 0], [], []>} : vector<8x64xbf16>, vector<64x64xbf16>, vector<8x64xf32> -> vector<8x64xf32>
    %69 = tpu.reciprocal %66 {approx = true} : vector<1x64xf32> -> vector<1x64xf32>
    %70 = vector.broadcast %69 : vector<1x64xf32> to vector<8x64xf32>
    %71 = arith.mulf %68, %70 : vector<8x64xf32>
    %cst_31 = arith.constant 0.000000e+00 : f32
    %72 = vector.broadcast %cst_31 : f32 to vector<8x64xf32>
    %73 = arith.maximumf %71, %72 : vector<8x64xf32>
    %74 = arith.addf %73, %52 : vector<8x64xf32>
    %cst_32 = arith.constant 0.000000e+00 : f32
    %75 = vector.broadcast %cst_32 : f32 to vector<8x64xf32>
    %76 = arith.maximumf %74, %75 : vector<8x64xf32>
    %c0_33 = arith.constant 0 : index
    %c0_34 = arith.constant 0 : index
    %77 = vector.load %arg6[%c0_33, %c0_34] : memref<16x256xf32, #tpu.memory_space<vmem>>, vector<8x64xf32>
    tpu.vector_store %arg6[%c0_33, %c0_34], %76 {strides = array<i32>} : memref<16x256xf32, #tpu.memory_space<vmem>>, vector<8x64xf32>,
    %c0_35 = arith.constant 0 : index
    %c0_36 = arith.constant 0 : index
    %78 = vector.load %arg6[%c0_35, %c0_36] : memref<16x256xf32, #tpu.memory_space<vmem>>, vector<4x64xf32>
    %c0_37 = arith.constant 0 : index
    %c0_38 = arith.constant 0 : index
    %c0_39 = arith.constant 0 : index
    %79 = vector.load %arg5[%c0_37, %c0_38, %c0_39] : memref<1x4x128xf32, #tpu.memory_space<vmem>>, vector<1x4x64xf32>
    %80 = vector.shape_cast %79 : vector<1x4x64xf32> to vector<4x64xf32>
    %81 = vector.shape_cast %78 : vector<4x64xf32> to vector<1x4x64xf32>
    tpu.vector_store %arg5[%c0_37, %c0_38, %c0_39], %81 {strides = array<i32>} : memref<1x4x128xf32, #tpu.memory_space<vmem>>, vector<1x4x64xf32>,
    %c4 = arith.constant 4 : index
    %c0_40 = arith.constant 0 : index
    %82 = vector.load %arg6[%c4, %c0_40] : memref<16x256xf32, #tpu.memory_space<vmem>>, vector<4x64xf32>
    %c0_41 = arith.constant 0 : index
    %c0_42 = arith.constant 0 : index
    %c64 = arith.constant 64 : index
    %83 = vector.load %arg5[%c0_41, %c0_42, %c64] : memref<1x4x128xf32, #tpu.memory_space<vmem>>, vector<1x4x64xf32>
    %84 = vector.shape_cast %83 : vector<1x4x64xf32> to vector<4x64xf32>
    %85 = vector.shape_cast %82 : vector<4x64xf32> to vector<1x4x64xf32>
    tpu.vector_store %arg5[%c0_41, %c0_42, %c64], %85 {strides = array<i32>} : memref<1x4x128xf32, #tpu.memory_space<vmem>>, vector<1x4x64xf32>,
    return
  }
  func.func @transform_0(%arg0: i32) -> (i32, i32) {
    %c0_i32 = arith.constant 0 : i32
    %c0_i32_0 = arith.constant 0 : i32
    %c0_i32_1 = arith.constant 0 : i32
    return %c0_i32, %c0_i32_0 : i32, i32
  }
  func.func @transform_1(%arg0: i32) -> (i32, i32) {
    %c0_i32 = arith.constant 0 : i32
    %c0_i32_0 = arith.constant 0 : i32
    %c0_i32_1 = arith.constant 0 : i32
    return %c0_i32, %c0_i32_0 : i32, i32
  }
  func.func @transform_2(%arg0: i32) -> (i32, i32) {
    %c0_i32 = arith.constant 0 : i32
    %c0_i32_0 = arith.constant 0 : i32
    %c0_i32_1 = arith.constant 0 : i32
    return %c0_i32, %c0_i32_0 : i32, i32
  }
  func.func @transform_3(%arg0: i32) -> (i32, i32, i32) {
    %c0_i32 = arith.constant 0 : i32
    %c0_i32_0 = arith.constant 0 : i32
    %c0_i32_1 = arith.constant 0 : i32
    return %arg0, %c0_i32, %c0_i32_0 : i32, i32, i32
  }
  func.func @transform_4(%arg0: i32) -> (i32, i32, i32) {
    %c0_i32 = arith.constant 0 : i32
    %c0_i32_0 = arith.constant 0 : i32
    %c0_i32_1 = arith.constant 0 : i32
    return %arg0, %c0_i32, %c0_i32_0 : i32, i32, i32
  }
}

</mosaic_0001>

<bundles_post_ra>
// kernel: tpu_custom_call.1
= control target key start
LH: loop header
LB: loop body
LE: loop exit
PB: predicated region body
PF: predicated region fallthrough
CT: control target
= control target key end

     0   :  { %9 = vsyncpa [#allocation4], 0  ;;  %s4650_s0 = inlined_call_operand.vmem [shape: f32[48,4], index: 0, kind: input, shape index: {}]   ;;  %s4651_s1 = inlined_call_operand.vmem [shape: f32[24,8], index: 1, kind: input, shape index: {}]   ;;  %s4652_s2 = inlined_call_operand.vmem [shape: f32[256,320], index: 2, kind: input, shape index: {}]   ;;  %s4653_s3 = inlined_call_operand.vmem [shape: f32[2,4,256], index: 3, kind: input, shape index: {}]   ;;  %s4654_s4 = inlined_call_operand.hbm [shape: f32[2,4,128], index: 4, kind: output, shape index: {}]  }
   0x1   :  { %11 = vsyncpa [#allocation4 + $0x1], 0  ;;  %s3491_s15 = smov 0   ;;  %s3493_s16 = smov 0  }
   0x2   :  { %s3495_s17 = smov 0   ;;  %s3497_s18 = smov 0  }
   0x3 LB: > { %s3512_s19 = sadd.s32 4294967295, %s3459_s18   ;;  %s2767_s20 = sadd.s32 4294967294, %s3459_s18   ;;  %s3459_s18 = sphi %s3497_s18, %s4757_s18   ;;  %s3455_s17 = sphi %s3495_s17, %s4756_s17   ;;  %s3451_s16 = sphi %s3493_s16, %s4755_s16   ;;  %s3447_s15 = sphi %s3491_s15, %s4754_s15  }
   0x4   : > { %s3516_s21 = sadd.s32 1, %s3459_s18   ;;  %s113_s22 = sadd.s32 1, %s3455_s17 }
   0x5   : > { %s110_s23 = ssub.s32 %s3459_s18, %s3516_s21  ;;  %p123_p0 = scmp.ne.s32.totalorder %s3455_s17, %s3451_s16 }
   0x6   : > { %p111_p1 = scmp.eq.s32.totalorder %s110_s23, 0  ;;  %p124_p2 = scmp.eq.s32.totalorder %s3512_s19, 1 }
   0x7   : > { %p129_p3 = scmp.ne.s32.totalorder %s3451_s16, %s3447_s15  ;;  %p130_p4 = scmp.eq.s32.totalorder %s2767_s20, 1 }
   0x8   : > { %s3527_s24 = scalar_select %p111_p1, %s3455_s17, %s113_s22  }
   0x9   : > { %p3529_p5 = por %p124_p2, %p123_p0  ;;  %p3533_p6 = por %p130_p4, %p129_p3 }
   0xa   : > { %p2770_p7 = scmp.ge.s32.totalorder %s3459_s18, 1  ;;  %p165_p8 = scmp.lt.s32.totalorder %s3459_s18, 3 }
   0xc   : > { %p166_p9 = pnand %p2770_p7, %p165_p8 }
   0xe   : > { %169 = sbr.rel (%p166_p9) target bundleno = 2802 (0xaf2), region = 36 }
  0x15   : > { %p191_p10 = scmp.lt.s32.totalorder %s3512_s19, 1  ;;  %v4655_v0 = vmov 0.0   ;;  %vm226_vm0 = vcmask 1043456   ;;  %v199_v3 = vld [vmem:[%s4650_s0] sm:$0xff]  ;;  %vm207_vm1 = vcmask 31744   ;;  %v200_v4 = vld [vmem:[%s4650_s0 + $0x8] sm:$0xff] }
  0x16   : > { %295 = vmatprep.mubr.f32.mxu0 %v4655_v0  ;;  %557 = vmatprep.mubr.f32.mxu1 %v4655_v0  ;;  %v201_v9 = vld [vmem:[%s4650_s0 + $0x10] sm:$0xff]  ;;  %vm396_vm2 = vcmask 64512   ;;  %v202_v10 = vld [vmem:[%s4650_s0 + $0x18] sm:$0xff]  ;;  %v203_v43 = vld [vmem:[%s4650_s0 + $0x20] sm:$0xff]  ;;  %vm3463_vm3 = vmmov 0   ;;  %s3464_s12 = smov 64  }
  0x17   : > { %s192_s27 = scalar_select %p191_p10, %s3512_s19, 1  ;;  %vm2518_vm4 = vcmask 523264   ;;  %vm2685_vm5 = vcmask 519168   ;;  %vm2692_vm6 = vcmask 1048068  }
  0x18   : > { %s188_s13 = sand.u32 1, %s3451_s16   ;;  %s2860_s22 = sshll.u32 %s3512_s19, 6 }
  0x19   : > { %s2863_s28 = sshll.u32 %s192_s27, 3  ;;  %s2771_s14 = sshll.u32 %s188_s13, 2 }
  0x1a   : > { %s195_s5 = scalar_lea.vmem %s4653_s3, %s2863_s28  ;;  %s190_s20 = scalar_lea.vmem [#allocation3], %s2771_s14 }
  0x1b   : > { %v198_v1 = vld [vmem:[%s195_s5] sm:$0xff]  ;;  %s2708_s23 = sshll.u32 %s190_s20, 4  ;;  %s4608_s29 = scalar_lea.hbm %s4654_s4, %s2860_s22  ;;  %s4610_s23 = int_to_ptr.vmem [resolvable:$true] %s2708_s23 }
  0x1c   : > { %v206_v2 = vcombine.high %v198_v1, %v198_v1  ;;  %s2695_s30 = scalar_lea.sflag [#allocation4], %s188_s13  ;;  %s3397_s5 = scalar_lea.vmem %s4610_s23, 64 }
  0x1d   : > { %p3398_p11 = scmp.ne.s32.totalorder %s4610_s23, %s3397_s5  ;;  %s3465_s19 = smov [#allocation3]  }
  0x1e   : > { %2774 = vmatprep.subr.msk.mxu0 %vm226_vm0, %v206_v2  ;;  %s3401_s6 = sshll.u32 %s3465_s19, 4  ;;  %s3402_s6 = int_to_ptr.vmem [resolvable:$false] %s3401_s6 }
  0x1f   : > { %2775 = vmatpush1.msk.msra.mxu0 %vm226_vm0, %v198_v1  ;;  %p3399_p12 = pnand %p3398_p11, %p3529_p5  ;;  %s3403_s7 = scalar_lea.vmem %s3402_s6, 128 }
  0x20   : > { %2776 = vmatmul.mubr.msk.f32.vlgmr.msra.gmra.mrb[0].mxu0 %vm207_vm1, %v199_v3  ;;  %p3404_p0 = scmp.lt.s32.totalorder %s4610_s23, %s3402_s6  ;;  %p3405_p1 = scmp.lt.s32.totalorder %s3403_s7, %s3397_s5 }
  0x21   : > { %301 = vmatprep.mubr.f32.mxu0 %v4655_v0  ;;  %p3400_p13 = pneg %p3399_p12 }
  0x22   : > { %p3406_p2 = por %p3405_p1, %p3404_p0 }
  0x24   : > { %2777 = vmatmul.mubr.msk.f32.gmra.mrb[2].mxu0 %vm207_vm1, %v200_v4  ;;  %p3407_p3 = pnand %p3406_p2, %p3400_p13 }
  0x25   : > { %307 = vmatprep.mubr.f32.mxu0 %v4655_v0 }
  0x28   : > { %2778 = vmatmul.mubr.msk.f32.gmra.mrb[4].mxu0 %vm207_vm1, %v201_v9 }
  0x29   : > { %313 = vmatprep.mubr.f32.mxu0 %v4655_v0 }
  0x2c   : > { %2779 = vmatmul.mubr.msk.f32.gmra.mrb[6].mxu0 %vm207_vm1, %v202_v10 }
  0x2d   : > { %319 = vmatprep.mubr.f32.mxu0 %v4655_v0 }
  0x30   : > { %2780 = vmatmul.mubr.msk.f32.gmra.mrb[8].mxu0 %vm207_vm1, %v203_v43 }
  0x31   : > { %325 = vmatprep.mubr.f32.mxu0 %v4655_v0 }
  0xf3   : > { %v297_v5 = vpop.f32.mrb[0].mxu0 }
  0xf4   : > { %332 = vxpose.xlu0.b32.start.end [1/1] (short) %v297_v5, 128  ;;  %v299_v6 = vpop.f32.mrb[1].mxu0 }
  0xf7   : > { %v303_v7 = vpop.f32.mrb[2].mxu0 }
  0xf8   : > { %v305_v8 = vpop.f32.mrb[3].mxu0 }
  0xf9   : > { %493 = vmatprep.subr.mxu1 %v305_v8 }
  0xfa   : > { %494 = vmatpush1.msra.mxu1 %v303_v7 }
 0x131   : > { %364 = vxpose.xlu0.b32.start.end [1/1] (short) %v299_v6, 128 }
 0x174   : > { %v348_v11 = vpop.trf.xlu0 }
 0x175   : > { %2782 = vmatmul.mubr.msk.f32.vlgmr.msra.gmra.mrb[0].mxu1 %vm396_vm2, %v348_v11 }
 0x176   : > { %563 = vmatprep.mubr.f32.mxu1 %v4655_v0 }
 0x178   : > { %v349_v12 = vpop.trf.xlu0 }
 0x179   : > { %2783 = vmatmul.mubr.msk.f32.gmra.mrb[2].mxu1 %vm396_vm2, %v349_v12 }
 0x17a   : > { %569 = vmatprep.mubr.f32.mxu1 %v4655_v0 }
 0x17c   : > { %v350_v13 = vpop.trf.xlu0 }
 0x17d   : > { %2784 = vmatmul.mubr.msk.f32.gmra.mrb[4].mxu1 %vm396_vm2, %v350_v13 }
 0x17e   : > { %575 = vmatprep.mubr.f32.mxu1 %v4655_v0 }
 0x180   : > { %v351_v14 = vpop.trf.xlu0 }
 0x181   : > { %2785 = vmatmul.mubr.msk.f32.gmra.mrb[6].mxu1 %vm396_vm2, %v351_v14 }
 0x182   : > { %581 = vmatprep.mubr.f32.mxu1 %v4655_v0 }
 0x184   : > { %v352_v15 = vpop.trf.xlu0 }
 0x185   : > { %2786 = vmatmul.mubr.msk.f32.gmra.mrb[8].mxu1 %vm396_vm2, %v352_v15 }
 0x186   : > { %587 = vmatprep.mubr.f32.mxu1 %v4655_v0 }
 0x188   : > { %v353_v16 = vpop.trf.xlu0 }
 0x189   : > { %2787 = vmatmul.mubr.msk.f32.gmra.mrb[10].mxu1 %vm396_vm2, %v353_v16 }
 0x18a   : > { %593 = vmatprep.mubr.f32.mxu1 %v4655_v0 }
 0x18c   : > { %v354_v17 = vpop.trf.xlu0 }
 0x18d   : > { %2788 = vmatmul.mubr.msk.f32.gmra.mrb[12].mxu1 %vm396_vm2, %v354_v17  ;;  %v3706_v17 = vpop.f32.mrb[4].mxu0 }
 0x18e   : > { %599 = vmatprep.mubr.f32.mxu1 %v4655_v0  ;;  %4691 = vst [vmem:[#allocation6_spill] sm:$0xff] %v3706_v17 }
 0x190   : > { %v355_v18 = vpop.trf.xlu0 }
 0x191   : > { %2789 = vmatmul.mubr.msk.f32.gmra.mrb[14].mxu1 %vm396_vm2, %v355_v18  ;;  %v311_v18 = vpop.f32.mrb[5].mxu0 }
 0x192   : > { %605 = vmatprep.mubr.f32.mxu1 %v4655_v0 }
 0x194   : > { %v356_v19 = vpop.trf.xlu0 }
 0x195   : > { %2790 = vmatmul.mubr.msk.f32.gmra.mrb[16].mxu1 %vm396_vm2, %v356_v19 }
 0x196   : > { %611 = vmatprep.mubr.f32.mxu1 %v4655_v0 }
 0x198   : > { %v357_v20 = vpop.trf.xlu0 }
 0x199   : > { %2791 = vmatmul.mubr.msk.f32.gmra.mrb[18].mxu1 %vm396_vm2, %v357_v20  ;;  %v1112_v20 = vpack.c.bf16 %v311_v18, %v311_v18 }
 0x19a   : > { %617 = vmatprep.mubr.f32.mxu1 %v4655_v0 }
 0x19c   : > { %v358_v21 = vpop.trf.xlu0 }
 0x19d   : > { %2792 = vmatmul.mubr.msk.f32.gmra.mrb[20].mxu1 %vm396_vm2, %v358_v21 }
 0x19e   : > { %623 = vmatprep.mubr.f32.mxu1 %v4655_v0 }
 0x1a0   : > { %v359_v22 = vpop.trf.xlu0 }
 0x1a1   : > { %2793 = vmatmul.mubr.msk.f32.gmra.mrb[22].mxu1 %vm396_vm2, %v359_v22 }
 0x1a2   : > { %629 = vmatprep.mubr.f32.mxu1 %v4655_v0 }
 0x1a4   : > { %v360_v23 = vpop.trf.xlu0 }
 0x1a5   : > { %2794 = vmatmul.mubr.msk.f32.gmra.mrb[24].mxu1 %vm396_vm2, %v360_v23  ;;  %v3714_v23 = vpop.f32.mrb[6].mxu0 }
 0x1a6   : > { %635 = vmatprep.mubr.f32.mxu1 %v4655_v0 }
 0x1a8   : > { %v361_v24 = vpop.trf.xlu0 }
 0x1a9   : > { %2795 = vmatmul.mubr.msk.f32.gmra.mrb[26].mxu1 %vm396_vm2, %v361_v24  ;;  %v3716_v24 = vpop.f32.mrb[7].mxu0 }
 0x1aa   : > { %641 = vmatprep.mubr.f32.mxu1 %v4655_v0 }
 0x1ac   : > { %v362_v25 = vpop.trf.xlu0 }
 0x1ad   : > { %2796 = vmatmul.mubr.msk.f32.gmra.mrb[28].mxu1 %vm396_vm2, %v362_v25 }
 0x1ae   : > { %647 = vmatprep.mubr.f32.mxu1 %v4655_v0 }
 0x1b0   : > { %v363_v26 = vpop.trf.xlu0 }
 0x1b1   : > { %2797 = vmatmul.mubr.msk.f32.gmra.mrb[30].mxu1 %vm396_vm2, %v363_v26 }
 0x1b2   : > { %653 = vmatprep.mubr.f32.mxu1 %v4655_v0 }
 0x1b4   : > { %v380_v27 = vpop.trf.xlu0 }
 0x1b5   : > { %2798 = vmatmul.mubr.msk.f32.gmra.mrb[32].mxu1 %vm396_vm2, %v380_v27 }
 0x1b6   : > { %659 = vmatprep.mubr.f32.mxu1 %v4655_v0 }
 0x1b8   : > { %v381_v28 = vpop.trf.xlu0 }
 0x1b9   : > { %2799 = vmatmul.mubr.msk.f32.gmra.mrb[34].mxu1 %vm396_vm2, %v381_v28 }
 0x1ba   : > { %665 = vmatprep.mubr.f32.mxu1 %v4655_v0 }
 0x1bc   : > { %v382_v29 = vpop.trf.xlu0 }
 0x1bd   : > { %2800 = vmatmul.mubr.msk.f32.gmra.mrb[36].mxu1 %vm396_vm2, %v382_v29 }
 0x1be   : > { %671 = vmatprep.mubr.f32.mxu1 %v4655_v0 }
 0x1c0   : > { %v383_v30 = vpop.trf.xlu0 }
 0x1c1   : > { %2801 = vmatmul.mubr.msk.f32.gmra.mrb[38].mxu1 %vm396_vm2, %v383_v30 }
 0x1c2   : > { %677 = vmatprep.mubr.f32.mxu1 %v4655_v0 }
 0x1c4   : > { %v384_v31 = vpop.trf.xlu0 }
 0x1c5   : > { %2802 = vmatmul.mubr.msk.f32.gmra.mrb[40].mxu1 %vm396_vm2, %v384_v31 }
 0x1c6   : > { %683 = vmatprep.mubr.f32.mxu1 %v4655_v0 }
 0x1c8   : > { %v385_v32 = vpop.trf.xlu0 }
 0x1c9   : > { %2803 = vmatmul.mubr.msk.f32.gmra.mrb[42].mxu1 %vm396_vm2, %v385_v32 }
 0x1ca   : > { %689 = vmatprep.mubr.f32.mxu1 %v4655_v0 }
 0x1cc   : > { %v386_v33 = vpop.trf.xlu0 }
 0x1cd   : > { %2804 = vmatmul.mubr.msk.f32.gmra.mrb[44].mxu1 %vm396_vm2, %v386_v33 }
 0x1ce   : > { %695 = vmatprep.mubr.f32.mxu1 %v4655_v0 }
 0x1d0   : > { %v387_v34 = vpop.trf.xlu0 }
 0x1d1   : > { %2805 = vmatmul.mubr.msk.f32.gmra.mrb[46].mxu1 %vm396_vm2, %v387_v34 }
 0x1d2   : > { %701 = vmatprep.mubr.f32.mxu1 %v4655_v0 }
 0x1d4   : > { %v388_v35 = vpop.trf.xlu0 }
 0x1d5   : > { %2806 = vmatmul.mubr.msk.f32.gmra.mrb[48].mxu1 %vm396_vm2, %v388_v35 }
 0x1d6   : > { %707 = vmatprep.mubr.f32.mxu1 %v4655_v0 }
 0x1d8   : > { %v389_v36 = vpop.trf.xlu0 }
 0x1d9   : > { %2807 = vmatmul.mubr.msk.f32.gmra.mrb[50].mxu1 %vm396_vm2, %v389_v36 }
 0x1da   : > { %713 = vmatprep.mubr.f32.mxu1 %v4655_v0 }
 0x1dc   : > { %v390_v37 = vpop.trf.xlu0 }
 0x1dd   : > { %2808 = vmatmul.mubr.msk.f32.gmra.mrb[52].mxu1 %vm396_vm2, %v390_v37 }
 0x1de   : > { %719 = vmatprep.mubr.f32.mxu1 %v4655_v0 }
 0x1e0   : > { %v391_v38 = vpop.trf.xlu0 }
 0x1e1   : > { %2809 = vmatmul.mubr.msk.f32.gmra.mrb[54].mxu1 %vm396_vm2, %v391_v38 }
 0x1e2   : > { %725 = vmatprep.mubr.f32.mxu1 %v4655_v0 }
 0x1e4   : > { %v392_v39 = vpop.trf.xlu0 }
 0x1e5   : > { %2810 = vmatmul.mubr.msk.f32.gmra.mrb[56].mxu1 %vm396_vm2, %v392_v39 }
 0x1e6   : > { %731 = vmatprep.mubr.f32.mxu1 %v4655_v0 }
 0x1e8   : > { %v393_v40 = vpop.trf.xlu0 }
 0x1e9   : > { %2811 = vmatmul.mubr.msk.f32.gmra.mrb[58].mxu1 %vm396_vm2, %v393_v40 }
 0x1ea   : > { %737 = vmatprep.mubr.f32.mxu1 %v4655_v0 }
 0x1ec   : > { %v394_v41 = vpop.trf.xlu0 }
 0x1ed   : > { %2812 = vmatmul.mubr.msk.f32.gmra.mrb[60].mxu1 %vm396_vm2, %v394_v41 }
 0x1ee   : > { %743 = vmatprep.mubr.f32.mxu1 %v4655_v0 }
 0x1f0   : > { %v395_v42 = vpop.trf.xlu0 }
 0x1f1   : > { %2813 = vmatmul.mubr.msk.f32.gmra.mrb[62].mxu1 %vm396_vm2, %v395_v42 }
 0x1f2   : > { %1145 = vmatprep.mubr.bf16.mxu1 %v1112_v20 }
 0x248   : > { %v3634_v44 = vpop.f32.mrb[0].mxu1 }
 0x249   : > { %v3636_v45 = vpop.f32.mrb[1].mxu1 }
 0x24a   : > { %v750_v46 = vmax.f32 %v3634_v44, %v3636_v45 }
 0x24c   : > { %751 = vmax.xlane.f32.xlu1 %v750_v46  ;;  %v3640_v47 = vpop.f32.mrb[2].mxu1 }
 0x24d   : > { %v3642_v48 = vpop.f32.mrb[3].mxu1 }
 0x24e   : > { %v753_v49 = vmax.f32 %v3640_v47, %v3642_v48 }
 0x250   : > { %754 = vmax.xlane.f32.xlu1 %v753_v49  ;;  %v3646_v50 = vpop.f32.mrb[4].mxu1 }
 0x251   : > { %v3648_v51 = vpop.f32.mrb[5].mxu1 }
 0x252   : > { %v756_v52 = vmax.f32 %v3646_v50, %v3648_v51 }
 0x254   : > { %757 = vmax.xlane.f32.xlu1 %v756_v52  ;;  %v3652_v53 = vpop.f32.mrb[6].mxu1 }
 0x255   : > { %v3654_v54 = vpop.f32.mrb[7].mxu1 }
 0x256   : > { %v759_v55 = vmax.f32 %v3652_v53, %v3654_v54 }
 0x258   : > { %760 = vmax.xlane.f32.xlu1 %v759_v55  ;;  %v3658_v56 = vpop.f32.mrb[8].mxu1 }
 0x259   : > { %v3660_v57 = vpop.f32.mrb[9].mxu1 }
 0x25a   : > { %v762_v58 = vmax.f32 %v3658_v56, %v3660_v57 }
 0x25c   : > { %763 = vmax.xlane.f32.xlu1 %v762_v58  ;;  %v3664_v59 = vpop.f32.mrb[10].mxu1 }
 0x25d   : > { %v3666_v60 = vpop.f32.mrb[11].mxu1 }
 0x25e   : > { %v765_v61 = vmax.f32 %v3664_v59, %v3666_v60 }
 0x260   : > { %766 = vmax.xlane.f32.xlu1 %v765_v61  ;;  %v3670_v62 = vpop.f32.mrb[12].mxu1 }
 0x261   : > { %v3672_v63 = vpop.f32.mrb[13].mxu1 }
 0x262   : > { %v768_v1 = vmax.f32 %v3670_v62, %v3672_v63 }
 0x264   : > { %769 = vmax.xlane.f32.xlu1 %v768_v1  ;;  %v3676_v2 = vpop.f32.mrb[14].mxu1 }
 0x265   : > { %v3678_v3 = vpop.f32.mrb[15].mxu1 }
 0x266   : > { %v771_v4 = vmax.f32 %v3676_v2, %v3678_v3 }
 0x268   : > { %772 = vmax.xlane.f32.xlu1 %v771_v4  ;;  %v3682_v5 = vpop.f32.mrb[16].mxu1 }
 0x269   : > { %v3684_v6 = vpop.f32.mrb[17].mxu1 }
 0x26a   : > { %v774_v7 = vmax.f32 %v3682_v5, %v3684_v6 }
 0x26c   : > { %775 = vmax.xlane.f32.xlu1 %v774_v7  ;;  %v3688_v8 = vpop.f32.mrb[18].mxu1 }
 0x26d   : > { %v3690_v9 = vpop.f32.mrb[19].mxu1 }
 0x26e   : > { %v777_v10 = vmax.f32 %v3688_v8, %v3690_v9 }
 0x270   : > { %778 = vmax.xlane.f32.xlu1 %v777_v10  ;;  %v3694_v11 = vpop.f32.mrb[20].mxu1 }
 0x271   : > { %v3696_v12 = vpop.f32.mrb[21].mxu1 }
 0x272   : > { %v780_v13 = vmax.f32 %v3694_v11, %v3696_v12 }
 0x274   : > { %781 = vmax.xlane.f32.xlu1 %v780_v13  ;;  %v3700_v14 = vpop.f32.mrb[22].mxu1 }
 0x275   : > { %v3702_v15 = vpop.f32.mrb[23].mxu1 }
 0x276   : > { %v783_v16 = vmax.f32 %v3700_v14, %v3702_v15 }
 0x278   : > { %784 = vmax.xlane.f32.xlu1 %v783_v16  ;;  %v3708_v19 = vpop.f32.mrb[24].mxu1 }
 0x279   : > { %v3710_v21 = vpop.f32.mrb[25].mxu1 }
 0x27a   : > { %v786_v22 = vmax.f32 %v3708_v19, %v3710_v21 }
 0x27c   : > { %787 = vmax.xlane.f32.xlu1 %v786_v22  ;;  %v3718_v25 = vpop.f32.mrb[26].mxu1 }
 0x27d   : > { %v3720_v26 = vpop.f32.mrb[27].mxu1 }
 0x27e   : > { %v789_v27 = vmax.f32 %v3718_v25, %v3720_v26 }
 0x280   : > { %790 = vmax.xlane.f32.xlu1 %v789_v27  ;;  %v3724_v28 = vpop.f32.mrb[28].mxu1 }
 0x281   : > { %v3726_v29 = vpop.f32.mrb[29].mxu1 }
 0x282   : > { %v792_v30 = vmax.f32 %v3724_v28, %v3726_v29 }
 0x284   : > { %793 = vmax.xlane.f32.xlu1 %v792_v30  ;;  %v3730_v31 = vpop.f32.mrb[30].mxu1 }
 0x285   : > { %v3732_v32 = vpop.f32.mrb[31].mxu1 }
 0x286   : > { %v795_v33 = vmax.f32 %v3730_v31, %v3732_v32 }
 0x288   : > { %796 = vmax.xlane.f32.xlu1 %v795_v33  ;;  %v3736_v34 = vpop.f32.mrb[32].mxu1 }
 0x289   : > { %v3738_v35 = vpop.f32.mrb[33].mxu1 }
 0x28a   : > { %v798_v36 = vmax.f32 %v3736_v34, %v3738_v35 }
 0x28c   : > { %799 = vmax.xlane.f32.xlu1 %v798_v36  ;;  %v3742_v37 = vpop.f32.mrb[34].mxu1 }
 0x28d   : > { %v3744_v38 = vpop.f32.mrb[35].mxu1 }
 0x28e   : > { %v801_v39 = vmax.f32 %v3742_v37, %v3744_v38 }
 0x290   : > { %802 = vmax.xlane.f32.xlu0 %v801_v39  ;;  %v3748_v40 = vpop.f32.mrb[36].mxu1 }
 0x291   : > { %v3750_v41 = vpop.f32.mrb[37].mxu1 }
 0x292   : > { %v804_v42 = vmax.f32 %v3748_v40, %v3750_v41 }
 0x294   : > { %805 = vmax.xlane.f32.xlu1 %v804_v42  ;;  %v3754_v43 = vpop.f32.mrb[38].mxu1 }
 0x295   : > { %v3756_v46 = vpop.f32.mrb[39].mxu1 }
 0x296   : > { %v807_v49 = vmax.f32 %v3754_v43, %v3756_v46 }
 0x298   : > { %808 = vmax.xlane.f32.xlu1 %v807_v49  ;;  %v3760_v52 = vpop.f32.mrb[40].mxu1 }
 0x299   : > { %v3762_v55 = vpop.f32.mrb[41].mxu1 }
 0x29a   : > { %v810_v58 = vmax.f32 %v3760_v52, %v3762_v55 }
 0x29c   : > { %811 = vmax.xlane.f32.xlu1 %v810_v58  ;;  %v3766_v61 = vpop.f32.mrb[42].mxu1 }
 0x29d   : > { %v3768_v1 = vpop.f32.mrb[43].mxu1 }
 0x29e   : > { %v813_v4 = vmax.f32 %v3766_v61, %v3768_v1 }
 0x2a0   : > { %814 = vmax.xlane.f32.xlu1 %v813_v4  ;;  %v3772_v7 = vpop.f32.mrb[44].mxu1 }
 0x2a1   : > { %v3774_v10 = vpop.f32.mrb[45].mxu1 }
 0x2a2   : > { %v816_v13 = vmax.f32 %v3772_v7, %v3774_v10 }
 0x2a4   : > { %817 = vmax.xlane.f32.xlu1 %v816_v13  ;;  %v3778_v16 = vpop.f32.mrb[46].mxu1 }
 0x2a5   : > { %v3780_v18 = vpop.f32.mrb[47].mxu1 }
 0x2a6   : > { %v819_v20 = vmax.f32 %v3778_v16, %v3780_v18 }
 0x2a8   : > { %820 = vmax.xlane.f32.xlu1 %v819_v20  ;;  %v3784_v22 = vpop.f32.mrb[48].mxu1 }
 0x2a9   : > { %v3786_v27 = vpop.f32.mrb[49].mxu1 }
 0x2aa   : > { %4692 = vst [vmem:[#allocation7_spill] sm:$0xff] %v3786_v27  ;;  %v822_v30 = vmax.f32 %v3784_v22, %v3786_v27 }
 0x2ac   : > { %823 = vmax.xlane.f32.xlu1 %v822_v30  ;;  %v3790_v33 = vpop.f32.mrb[50].mxu1 }
 0x2ad   : > { %4693 = vst [vmem:[#allocation8_spill] sm:$0xff] %v3790_v33  ;;  %v3792_v36 = vpop.f32.mrb[51].mxu1 }
 0x2ae   : > { %4694 = vst [vmem:[#allocation9_spill] sm:$0xff] %v3792_v36  ;;  %v825_v39 = vmax.f32 %v3790_v33, %v3792_v36 }
 0x2b0   : > { %826 = vmax.xlane.f32.xlu1 %v825_v39  ;;  %v3796_v42 = vpop.f32.mrb[52].mxu1 }
 0x2b1   : > { %4695 = vst [vmem:[#allocation10_spill] sm:$0xff] %v3796_v42  ;;  %v3798_v49 = vpop.f32.mrb[53].mxu1 }
 0x2b2   : > { %4696 = vst [vmem:[#allocation11_spill] sm:$0xff] %v3798_v49  ;;  %v828_v58 = vmax.f32 %v3796_v42, %v3798_v49 }
 0x2b4   : > { %829 = vmax.xlane.f32.xlu1 %v828_v58  ;;  %v3802_v4 = vpop.f32.mrb[54].mxu1 }
 0x2b5   : > { %4697 = vst [vmem:[#allocation12_spill] sm:$0xff] %v3802_v4  ;;  %v3804_v13 = vpop.f32.mrb[55].mxu1 }
 0x2b6   : > { %4698 = vst [vmem:[#allocation13_spill] sm:$0xff] %v3804_v13  ;;  %v831_v20 = vmax.f32 %v3802_v4, %v3804_v13 }
 0x2b8   : > { %832 = vmax.xlane.f32.xlu1 %v831_v20  ;;  %v3808_v30 = vpop.f32.mrb[56].mxu1 }
 0x2b9   : > { %4699 = vst [vmem:[#allocation14_spill] sm:$0xff] %v3808_v30  ;;  %v3810_v0 = vpop.f32.mrb[57].mxu1 }
 0x2ba   : > { %4700 = vst [vmem:[#allocation15_spill] sm:$0xff] %v3810_v0  ;;  %v834_v39 = vmax.f32 %v3808_v30, %v3810_v0 }
 0x2bc   : > { %835 = vmax.xlane.f32.xlu1 %v834_v39  ;;  %v3814_v17 = vpop.f32.mrb[58].mxu1 }
 0x2bd   : > { %4701 = vst [vmem:[#allocation16_spill] sm:$0xff] %v3814_v17  ;;  %v3816_v49 = vpop.f32.mrb[59].mxu1  ;;  %1198 = vxpose.xlu0.b32.start.end [1/1] (short) %v3716_v24, 128 }
 0x2be   : > { %4702 = vst [vmem:[#allocation17_spill] sm:$0xff] %v3816_v49  ;;  %v837_v58 = vmax.f32 %v3814_v17, %v3816_v49 }
 0x2c0   : > { %838 = vmax.xlane.f32.xlu1 %v837_v58  ;;  %v3821_v13 = vpop.f32.mrb[60].mxu1 }
 0x2c1   : > { %4703 = vst [vmem:[#allocation18_spill] sm:$0xff] %v3821_v13  ;;  %v3823_v20 = vpop.f32.mrb[61].mxu1 }
 0x2c2   : > { %4704 = vst [vmem:[#allocation19_spill] sm:$0xff] %v3823_v20  ;;  %v840_v4 = vmax.f32 %v3821_v13, %v3823_v20 }
 0x2c4   : > { %841 = vmax.xlane.f32.xlu1 %v840_v4  ;;  %v3827_v0 = vpop.f32.mrb[62].mxu1 }
 0x2c5   : > { %v3829_v39 = vpop.f32.mrb[63].mxu1 }
 0x2c6   : > { %4705 = vst [vmem:[#allocation20_spill] sm:$0xff] %v3829_v39  ;;  %v843_v30 = vmax.f32 %v3827_v0, %v3829_v39 }
 0x2c8   : > { %844 = vmax.xlane.f32.xlu1 %v843_v30 }
 0x2d9   : > { %v752_v24 = vpop.xlane.xlu1 %751 }
 0x2da   : > { %v846_v49 = vsub.f32 %v3634_v44, %v752_v24  ;;  %v847_v58 = vsub.f32 %v3636_v45, %v752_v24 }
 0x2dc   : > { %v910_v17 = vmul.f32 1.442695, %v846_v49  ;;  %v912_v42 = vmul.f32 1.442695, %v847_v58 }
 0x2dd   : > { %v755_v36 = vpop.xlane.xlu1 %754 }
 0x2de   : > { %v848_v33 = vsub.f32 %v3640_v47, %v755_v36  ;;  %v849_v4 = vsub.f32 %v3642_v48, %v755_v36  ;;  %3114 = vpow2.f32 %v910_v17  ;;  %v204_v36 = vld [vmem:[%s4650_s0 + $0x28] sm:$0xff] }
 0x2df   : > { %3116 = vpow2.f32 %v912_v42  ;;  %2781 = vmatmul.mubr.msk.f32.gmra.mrb[10].mxu0 %vm207_vm1, %v204_v36 }
 0x2e0   : > { %v914_v20 = vmul.f32 1.442695, %v848_v33  ;;  %v916_v13 = vmul.f32 1.442695, %v849_v4 }
 0x2e1   : > { %v758_v27 = vpop.xlane.xlu1 %757 }
 0x2e2   : > { %3118 = vpow2.f32 %v914_v20  ;;  %v850_v30 = vsub.f32 %v3646_v50, %v758_v27  ;;  %v851_v39 = vsub.f32 %v3648_v51, %v758_v27 }
 0x2e3   : > { %3120 = vpow2.f32 %v916_v13 }
 0x2e4   : > { %v918_v44 = vmul.f32 1.442695, %v850_v30  ;;  %v920_v45 = vmul.f32 1.442695, %v851_v39 }
 0x2e5   : > { %v761_v49 = vpop.xlane.xlu1 %760 }
 0x2e6   : > { %v852_v24 = vsub.f32 %v3652_v53, %v761_v49  ;;  %v853_v47 = vsub.f32 %v3654_v54, %v761_v49  ;;  %3122 = vpow2.f32 %v918_v44  ;;  %v4671_v54 = vmov 1065369472  }
 0x2e7   : > { %3124 = vpow2.f32 %v920_v45  ;;  %1102 = vmatprep.mubr.bf16.mxu0 %v4671_v54 }
 0x2e8   : > { %v922_v48 = vmul.f32 1.442695, %v852_v24  ;;  %v924_v17 = vmul.f32 1.442695, %v853_v47  ;;  %v3115_v50 = vpop.eup %3114 }
 0x2e9   : > { %v764_v33 = vpop.xlane.xlu1 %763  ;;  %v3117_v53 = vpop.eup %3116 }
 0x2ea   : > { %3126 = vpow2.f32 %v922_v48  ;;  %v854_v51 = vsub.f32 %v3658_v56, %v764_v33  ;;  %v855_v27 = vsub.f32 %v3660_v57, %v764_v33 }
 0x2eb   : > { %3128 = vpow2.f32 %v924_v17 }
 0x2ec   : > { %v3119_v42 = vpop.eup %3118  ;;  %v926_v13 = vmul.f32 1.442695, %v854_v51  ;;  %v928_v39 = vmul.f32 1.442695, %v855_v27  ;;  %v3852_v27 = vpop.f32.mrb[8].mxu0 }
 0x2ed   : > { %v3121_v20 = vpop.eup %3120  ;;  %v767_v58 = vpop.xlane.xlu1 %766  ;;  %v1038_v4 = vpack.c.bf16 %v3119_v42, %v3115_v50 }
 0x2ee   : > { %v856_v30 = vsub.f32 %v3664_v59, %v767_v58  ;;  %v857_v44 = vsub.f32 %v3666_v60, %v767_v58  ;;  %v1039_v56 = vpack.c.bf16 %v3121_v20, %v3117_v53  ;;  %3130 = vpow2.f32 %v926_v13  ;;  %v3856_v20 = vpop.f32.mrb[9].mxu0 }
 0x2ef   : > { %3132 = vpow2.f32 %v928_v39 }
 0x2f0   : > { %v930_v57 = vmul.f32 1.442695, %v856_v30  ;;  %v932_v45 = vmul.f32 1.442695, %v857_v44  ;;  %1070 = vmatprep.subr.bf16.mxu0 %v1039_v56  ;;  %1113 = vmatprep.subr.bf16.mxu1 %v1039_v56  ;;  %v3123_v24 = vpop.eup %3122 }
 0x2f1   : > { %1071 = vmatpush1.bf16.xpose.msra.mxu0 %v1038_v4  ;;  %1114 = vmatpush1.bf16.xpose.msra.mxu1 %v1038_v4  ;;  %v770_v49 = vpop.xlane.xlu1 %769  ;;  %v3125_v17 = vpop.eup %3124 }
 0x2f2   : > { %3134 = vpow2.f32 %v930_v57  ;;  %v858_v47 = vsub.f32 %v3670_v62, %v770_v49  ;;  %v859_v48 = vsub.f32 %v3672_v63, %v770_v49 }
 0x2f3   : > { %3136 = vpow2.f32 %v932_v45 }
 0x2f4   : > { %v3127_v59 = vpop.eup %3126  ;;  %v934_v60 = vmul.f32 1.442695, %v858_v47  ;;  %v936_v36 = vmul.f32 1.442695, %v859_v48 }
 0x2f5   : > { %v3129_v33 = vpop.eup %3128  ;;  %v773_v50 = vpop.xlane.xlu1 %772  ;;  %v1040_v51 = vpack.c.bf16 %v3127_v59, %v3123_v24 }
 0x2f6   : > { %v860_v53 = vsub.f32 %v3676_v2, %v773_v50  ;;  %v861_v42 = vsub.f32 %v3678_v3, %v773_v50  ;;  %v1041_v13 = vpack.c.bf16 %v3129_v33, %v3125_v17  ;;  %3138 = vpow2.f32 %v934_v60 }
 0x2f7   : > { %3140 = vpow2.f32 %v936_v36 }
 0x2f8   : > { %v938_v62 = vmul.f32 1.442695, %v860_v53  ;;  %v940_v63 = vmul.f32 1.442695, %v861_v42  ;;  %1072 = vmatprep.subr.bf16.mxu0 %v1041_v13  ;;  %1115 = vmatprep.subr.bf16.mxu1 %v1041_v13  ;;  %v3131_v58 = vpop.eup %3130 }
 0x2f9   : > { %1073 = vmatpush1.bf16.xpose.msra.mxu0 %v1040_v51  ;;  %1116 = vmatpush1.bf16.xpose.msra.mxu1 %v1040_v51  ;;  %v776_v39 = vpop.xlane.xlu1 %775  ;;  %v3133_v30 = vpop.eup %3132 }
 0x2fa   : > { %3142 = vpow2.f32 %v938_v62  ;;  %v862_v4 = vsub.f32 %v3682_v5, %v776_v39  ;;  %v863_v2 = vsub.f32 %v3684_v6, %v776_v39 }
 0x2fb   : > { %3144 = vpow2.f32 %v940_v63  ;;  %1166 = vxpose.xlu1.b32.start.end [1/1] (short) %v3714_v23, 128 }
 0x2fc   : > { %v3135_v3 = vpop.eup %3134  ;;  %v942_v44 = vmul.f32 1.442695, %v862_v4  ;;  %v944_v57 = vmul.f32 1.442695, %v863_v2 }
 0x2fd   : > { %v3137_v56 = vpop.eup %3136  ;;  %v779_v45 = vpop.xlane.xlu1 %778  ;;  %v1042_v49 = vpack.c.bf16 %v3135_v3, %v3131_v58 }
 0x2fe   : > { %v864_v24 = vsub.f32 %v3688_v8, %v779_v45  ;;  %v865_v47 = vsub.f32 %v3690_v9, %v779_v45  ;;  %v1043_v48 = vpack.c.bf16 %v3137_v56, %v3133_v30  ;;  %3146 = vpow2.f32 %v942_v44 }
 0x2ff   : > { %3148 = vpow2.f32 %v944_v57 }
 0x300   : > { %v946_v17 = vmul.f32 1.442695, %v864_v24  ;;  %v948_v5 = vmul.f32 1.442695, %v865_v47  ;;  %1074 = vmatprep.subr.bf16.mxu0 %v1043_v48  ;;  %1117 = vmatprep.subr.bf16.mxu1 %v1043_v48  ;;  %v3139_v23 = vpop.eup %3138 }
 0x301   : > { %1075 = vmatpush1.bf16.xpose.msra.mxu0 %v1042_v49  ;;  %1118 = vmatpush1.bf16.xpose.msra.mxu1 %v1042_v49  ;;  %v782_v6 = vpop.xlane.xlu1 %781  ;;  %v3141_v33 = vpop.eup %3140 }
 0x302   : > { %3150 = vpow2.f32 %v946_v17  ;;  %v866_v59 = vsub.f32 %v3694_v11, %v782_v6  ;;  %v867_v60 = vsub.f32 %v3696_v12, %v782_v6 }
 0x303   : > { %3152 = vpow2.f32 %v948_v5 }
 0x304   : > { %v3143_v8 = vpop.eup %3142  ;;  %v950_v9 = vmul.f32 1.442695, %v866_v59  ;;  %v952_v50 = vmul.f32 1.442695, %v867_v60 }
 0x305   : > { %v3145_v36 = vpop.eup %3144  ;;  %v785_v51 = vpop.xlane.xlu1 %784  ;;  %v1044_v53 = vpack.c.bf16 %v3143_v8, %v3139_v23 }
 0x306   : > { %v868_v42 = vsub.f32 %v3700_v14, %v785_v51  ;;  %v869_v13 = vsub.f32 %v3702_v15, %v785_v51  ;;  %v1045_v62 = vpack.c.bf16 %v3145_v36, %v3141_v33  ;;  %3154 = vpow2.f32 %v950_v9 }
 0x307   : > { %3156 = vpow2.f32 %v952_v50 }
 0x308   : > { %v954_v63 = vmul.f32 1.442695, %v868_v42  ;;  %v956_v39 = vmul.f32 1.442695, %v869_v13  ;;  %1076 = vmatprep.subr.bf16.mxu0 %v1045_v62  ;;  %1119 = vmatprep.subr.bf16.mxu1 %v1045_v62  ;;  %v3147_v12 = vpop.eup %3146 }
 0x309   : > { %1077 = vmatpush1.bf16.xpose.msra.mxu0 %v1044_v53  ;;  %1120 = vmatpush1.bf16.xpose.msra.mxu1 %v1044_v53  ;;  %v788_v11 = vpop.xlane.xlu1 %787  ;;  %v3149_v2 = vpop.eup %3148 }
 0x30a   : > { %3158 = vpow2.f32 %v954_v63  ;;  %v870_v58 = vsub.f32 %v3708_v19, %v788_v11  ;;  %v871_v4 = vsub.f32 %v3710_v21, %v788_v11 }
 0x30b   : > { %3160 = vpow2.f32 %v956_v39 }
 0x30c   : > { %v3151_v14 = vpop.eup %3150  ;;  %v958_v15 = vmul.f32 1.442695, %v870_v58  ;;  %v960_v3 = vmul.f32 1.442695, %v871_v4 }
 0x30d   : > { %v3153_v30 = vpop.eup %3152  ;;  %v791_v44 = vpop.xlane.xlu1 %790  ;;  %v1046_v56 = vpack.c.bf16 %v3151_v14, %v3147_v12 }
 0x30e   : > { %v872_v57 = vsub.f32 %v3718_v25, %v791_v44  ;;  %v873_v45 = vsub.f32 %v3720_v26, %v791_v44  ;;  %v1047_v49 = vpack.c.bf16 %v3153_v30, %v3149_v2  ;;  %3162 = vpow2.f32 %v958_v15 }
 0x30f   : > { %3164 = vpow2.f32 %v960_v3 }
 0x310   : > { %v962_v24 = vmul.f32 1.442695, %v872_v57  ;;  %v964_v47 = vmul.f32 1.442695, %v873_v45  ;;  %1078 = vmatprep.subr.bf16.mxu0 %v1047_v49  ;;  %1121 = vmatprep.subr.bf16.mxu1 %v1047_v49  ;;  %v3155_v21 = vpop.eup %3154 }
 0x311   : > { %1079 = vmatpush1.bf16.xpose.msra.mxu0 %v1046_v56  ;;  %1122 = vmatpush1.bf16.xpose.msra.mxu1 %v1046_v56  ;;  %v794_v19 = vpop.xlane.xlu1 %793  ;;  %v3157_v5 = vpop.eup %3156 }
 0x312   : > { %3166 = vpow2.f32 %v962_v24  ;;  %v874_v48 = vsub.f32 %v3724_v28, %v794_v19  ;;  %v875_v17 = vsub.f32 %v3726_v29, %v794_v19 }
 0x313   : > { %3168 = vpow2.f32 %v964_v47 }
 0x314   : > { %v3159_v25 = vpop.eup %3158  ;;  %v966_v26 = vmul.f32 1.442695, %v874_v48  ;;  %v968_v23 = vmul.f32 1.442695, %v875_v17 }
 0x315   : > { %v3161_v6 = vpop.eup %3160  ;;  %v797_v59 = vpop.xlane.xlu1 %796  ;;  %v1048_v60 = vpack.c.bf16 %v3159_v25, %v3155_v21 }
 0x316   : > { %v876_v33 = vsub.f32 %v3730_v31, %v797_v59  ;;  %v877_v8 = vsub.f32 %v3732_v32, %v797_v59  ;;  %v1049_v9 = vpack.c.bf16 %v3161_v6, %v3157_v5  ;;  %3170 = vpow2.f32 %v966_v26 }
 0x317   : > { %3172 = vpow2.f32 %v968_v23 }
 0x318   : > { %v970_v36 = vmul.f32 1.442695, %v876_v33  ;;  %v972_v50 = vmul.f32 1.442695, %v877_v8  ;;  %1080 = vmatprep.subr.bf16.mxu0 %v1049_v9  ;;  %1123 = vmatprep.subr.bf16.mxu1 %v1049_v9  ;;  %v3163_v29 = vpop.eup %3162 }
 0x319   : > { %1081 = vmatpush1.bf16.xpose.msra.mxu0 %v1048_v60  ;;  %1124 = vmatpush1.bf16.xpose.msra.mxu1 %v1048_v60  ;;  %v800_v28 = vpop.xlane.xlu1 %799  ;;  %v3165_v42 = vpop.eup %3164 }
 0x31a   : > { %3174 = vpow2.f32 %v970_v36  ;;  %v878_v51 = vsub.f32 %v3736_v34, %v800_v28  ;;  %v879_v53 = vsub.f32 %v3738_v35, %v800_v28 }
 0x31b   : > { %3176 = vpow2.f32 %v972_v50 }
 0x31c   : > { %v3167_v31 = vpop.eup %3166  ;;  %v974_v32 = vmul.f32 1.442695, %v878_v51  ;;  %v976_v62 = vmul.f32 1.442695, %v879_v53 }
 0x31d   : > { %v3169_v13 = vpop.eup %3168  ;;  %v803_v63 = vpop.xlane.xlu0 %802  ;;  %v1050_v39 = vpack.c.bf16 %v3167_v31, %v3163_v29 }
 0x31e   : > { %v880_v11 = vsub.f32 %v3742_v37, %v803_v63  ;;  %v881_v12 = vsub.f32 %v3744_v38, %v803_v63  ;;  %v1051_v58 = vpack.c.bf16 %v3169_v13, %v3165_v42  ;;  %3178 = vpow2.f32 %v974_v32 }
 0x31f   : > { %3180 = vpow2.f32 %v976_v62 }
 0x320   : > { %v978_v4 = vmul.f32 1.442695, %v880_v11  ;;  %v980_v2 = vmul.f32 1.442695, %v881_v12  ;;  %1082 = vmatprep.subr.bf16.mxu0 %v1051_v58  ;;  %1125 = vmatprep.subr.bf16.mxu1 %v1051_v58  ;;  %v3171_v35 = vpop.eup %3170 }
 0x321   : > { %1083 = vmatpush1.bf16.xpose.msra.mxu0 %v1050_v39  ;;  %1126 = vmatpush1.bf16.xpose.msra.mxu1 %v1050_v39  ;;  %v806_v34 = vpop.xlane.xlu1 %805  ;;  %v3173_v30 = vpop.eup %3172  ;;  %v4706_v39 = vld [vmem:[#allocation7_spill] sm:$0xff] }
 0x322   : > { %3182 = vpow2.f32 %v978_v4  ;;  %v882_v14 = vsub.f32 %v3748_v40, %v806_v34  ;;  %v883_v15 = vsub.f32 %v3750_v41, %v806_v34 }
 0x323   : > { %3184 = vpow2.f32 %v980_v2 }
 0x324   : > { %v3175_v37 = vpop.eup %3174  ;;  %v982_v38 = vmul.f32 1.442695, %v882_v14  ;;  %v984_v44 = vmul.f32 1.442695, %v883_v15  ;;  %v4708_v15 = vld [vmem:[#allocation9_spill] sm:$0xff] }
 0x325   : > { %v3177_v3 = vpop.eup %3176  ;;  %v809_v56 = vpop.xlane.xlu1 %808  ;;  %v1052_v57 = vpack.c.bf16 %v3175_v37, %v3171_v35  ;;  %v4707_v35 = vld [vmem:[#allocation8_spill] sm:$0xff] }
 0x326   : > { %v884_v45 = vsub.f32 %v3754_v43, %v809_v56  ;;  %v885_v49 = vsub.f32 %v3756_v46, %v809_v56  ;;  %v1053_v24 = vpack.c.bf16 %v3177_v3, %v3173_v30  ;;  %3186 = vpow2.f32 %v982_v38  ;;  %v4709_v56 = vld [vmem:[#allocation10_spill] sm:$0xff] }
 0x327   : > { %3188 = vpow2.f32 %v984_v44 }
 0x328   : > { %v986_v47 = vmul.f32 1.442695, %v884_v45  ;;  %v988_v19 = vmul.f32 1.442695, %v885_v49  ;;  %1084 = vmatprep.subr.bf16.mxu0 %v1053_v24  ;;  %1127 = vmatprep.subr.bf16.mxu1 %v1053_v24  ;;  %v3179_v41 = vpop.eup %3178  ;;  %v4710_v45 = vld [vmem:[#allocation11_spill] sm:$0xff] }
 0x329   : > { %1085 = vmatpush1.bf16.xpose.msra.mxu0 %v1052_v57  ;;  %1128 = vmatpush1.bf16.xpose.msra.mxu1 %v1052_v57  ;;  %v812_v40 = vpop.xlane.xlu1 %811  ;;  %v3181_v17 = vpop.eup %3180 }
 0x32a   : > { %3190 = vpow2.f32 %v986_v47  ;;  %v886_v21 = vsub.f32 %v3760_v52, %v812_v40  ;;  %v887_v48 = vsub.f32 %v3762_v55, %v812_v40 }
 0x32b   : > { %3192 = vpow2.f32 %v988_v19 }
 0x32c   : > { %v3183_v43 = vpop.eup %3182  ;;  %v990_v46 = vmul.f32 1.442695, %v886_v21  ;;  %v992_v25 = vmul.f32 1.442695, %v887_v48 }
 0x32d   : > { %v3185_v5 = vpop.eup %3184  ;;  %v815_v26 = vpop.xlane.xlu1 %814  ;;  %v1054_v6 = vpack.c.bf16 %v3183_v43, %v3179_v41 }
 0x32e   : > { %v888_v23 = vsub.f32 %v3766_v61, %v815_v26  ;;  %v889_v59 = vsub.f32 %v3768_v1, %v815_v26  ;;  %v1055_v60 = vpack.c.bf16 %v3185_v5, %v3181_v17  ;;  %3194 = vpow2.f32 %v990_v46  ;;  %v4711_v17 = vld [vmem:[#allocation12_spill] sm:$0xff]  ;;  %v4712_v46 = vld [vmem:[#allocation13_spill] sm:$0xff] }
 0x32f   : > { %3196 = vpow2.f32 %v992_v25 }
 0x330   : > { %v994_v33 = vmul.f32 1.442695, %v888_v23  ;;  %v996_v8 = vmul.f32 1.442695, %v889_v59  ;;  %1086 = vmatprep.subr.bf16.mxu0 %v1055_v60  ;;  %1129 = vmatprep.subr.bf16.mxu1 %v1055_v60  ;;  %v3187_v55 = vpop.eup %3186  ;;  %v4713_v60 = vld [vmem:[#allocation14_spill] sm:$0xff] }
 0x331   : > { %1087 = vmatpush1.bf16.xpose.msra.mxu0 %v1054_v6  ;;  %1130 = vmatpush1.bf16.xpose.msra.mxu1 %v1054_v6  ;;  %v818_v52 = vpop.xlane.xlu1 %817  ;;  %v3189_v50 = vpop.eup %3188 }
 0x332   : > { %3198 = vpow2.f32 %v994_v33  ;;  %v890_v9 = vsub.f32 %v3772_v7, %v818_v52  ;;  %v891_v36 = vsub.f32 %v3774_v10, %v818_v52 }
 0x333   : > { %3200 = vpow2.f32 %v996_v8  ;;  %v4714_v8 = vld [vmem:[#allocation15_spill] sm:$0xff] }
 0x334   : > { %v3191_v61 = vpop.eup %3190  ;;  %v998_v1 = vmul.f32 1.442695, %v890_v9  ;;  %v1000_v29 = vmul.f32 1.442695, %v891_v36 }
 0x335   : > { %v3193_v28 = vpop.eup %3192  ;;  %v821_v51 = vpop.xlane.xlu1 %820  ;;  %v1056_v53 = vpack.c.bf16 %v3191_v61, %v3187_v55 }
 0x336   : > { %v892_v42 = vsub.f32 %v3778_v16, %v821_v51  ;;  %v893_v31 = vsub.f32 %v3780_v18, %v821_v51  ;;  %v1057_v32 = vpack.c.bf16 %v3193_v28, %v3189_v50  ;;  %3202 = vpow2.f32 %v998_v1 }
 0x337   : > { %3204 = vpow2.f32 %v1000_v29  ;;  %v4715_v29 = vld [vmem:[#allocation16_spill] sm:$0xff] }
 0x338   : > { %v1002_v13 = vmul.f32 1.442695, %v892_v42  ;;  %v1004_v62 = vmul.f32 1.442695, %v893_v31  ;;  %1088 = vmatprep.subr.bf16.mxu0 %v1057_v32  ;;  %1131 = vmatprep.subr.bf16.mxu1 %v1057_v32  ;;  %v3195_v10 = vpop.eup %3194 }
 0x339   : > { %1089 = vmatpush1.bf16.xpose.msra.mxu0 %v1056_v53  ;;  %1132 = vmatpush1.bf16.xpose.msra.mxu1 %v1056_v53  ;;  %v824_v7 = vpop.xlane.xlu1 %823  ;;  %v3197_v12 = vpop.eup %3196  ;;  %v4716_v53 = vld [vmem:[#allocation17_spill] sm:$0xff] }
 0x33a   : > { %3206 = vpow2.f32 %v1002_v13  ;;  %v894_v63 = vsub.f32 %v3784_v22, %v824_v7  ;;  %v895_v11 = vsub.f32 %v4706_v39, %v824_v7  ;;  %v4718_v39 = vld [vmem:[#allocation19_spill] sm:$0xff] }
 0x33b   : > { %3208 = vpow2.f32 %v1004_v62 }
 0x33c   : > { %v3199_v16 = vpop.eup %3198  ;;  %v1006_v18 = vmul.f32 1.442695, %v894_v63  ;;  %v1008_v4 = vmul.f32 1.442695, %v895_v11 }
 0x33d   : > { %v3201_v58 = vpop.eup %3200  ;;  %v827_v2 = vpop.xlane.xlu1 %826  ;;  %v1058_v34 = vpack.c.bf16 %v3199_v16, %v3195_v10  ;;  %v4717_v10 = vld [vmem:[#allocation18_spill] sm:$0xff] }
 0x33e   : > { %v896_v14 = vsub.f32 %v4707_v35, %v827_v2  ;;  %v897_v30 = vsub.f32 %v4708_v15, %v827_v2  ;;  %v1059_v37 = vpack.c.bf16 %v3201_v58, %v3197_v12  ;;  %3210 = vpow2.f32 %v1006_v18 }
 0x33f   : > { %3212 = vpow2.f32 %v1008_v4 }
 0x340   : > { %v1010_v38 = vmul.f32 1.442695, %v896_v14  ;;  %v1012_v3 = vmul.f32 1.442695, %v897_v30  ;;  %1090 = vmatprep.subr.bf16.mxu0 %v1059_v37  ;;  %1133 = vmatprep.subr.bf16.mxu1 %v1059_v37  ;;  %v3203_v44 = vpop.eup %3202  ;;  %v4719_v14 = vld [vmem:[#allocation20_spill] sm:$0xff] }
 0x341   : > { %1091 = vmatpush1.bf16.xpose.msra.mxu0 %v1058_v34  ;;  %1134 = vmatpush1.bf16.xpose.msra.mxu1 %v1058_v34  ;;  %v830_v22 = vpop.xlane.xlu1 %829  ;;  %v3205_v24 = vpop.eup %3204 }
 0x342   : > { %3214 = vpow2.f32 %v1010_v38  ;;  %v898_v57 = vsub.f32 %v4709_v56, %v830_v22  ;;  %v899_v49 = vsub.f32 %v4710_v45, %v830_v22 }
 0x343   : > { %3216 = vpow2.f32 %v1012_v3 }
 0x344   : > { %v3207_v47 = vpop.eup %3206  ;;  %v1014_v19 = vmul.f32 1.442695, %v898_v57  ;;  %v1016_v41 = vmul.f32 1.442695, %v899_v49 }
 0x345   : > { %v3209_v40 = vpop.eup %3208  ;;  %v833_v21 = vpop.xlane.xlu1 %832  ;;  %v1060_v48 = vpack.c.bf16 %v3207_v47, %v3203_v44 }
 0x346   : > { %v900_v43 = vsub.f32 %v4711_v17, %v833_v21  ;;  %v901_v5 = vsub.f32 %v4712_v46, %v833_v21  ;;  %v1061_v25 = vpack.c.bf16 %v3209_v40, %v3205_v24  ;;  %3218 = vpow2.f32 %v1014_v19 }
 0x347   : > { %3220 = vpow2.f32 %v1016_v41  ;;  %v4720_v41 = vld [vmem:[#allocation6_spill] sm:$0xff] }
 0x348   : > { %v1018_v26 = vmul.f32 1.442695, %v900_v43  ;;  %v1020_v6 = vmul.f32 1.442695, %v901_v5  ;;  %1092 = vmatprep.subr.bf16.mxu0 %v1061_v25  ;;  %1135 = vmatprep.subr.bf16.mxu1 %v1061_v25  ;;  %v3211_v59 = vpop.eup %3210  ;;  %v1111_v21 = vpack.c.bf16 %v4720_v41, %v4720_v41 }
 0x349   : > { %1093 = vmatpush1.bf16.xpose.msra.mxu0 %v1060_v48  ;;  %1136 = vmatpush1.bf16.xpose.msra.mxu1 %v1060_v48  ;;  %v836_v23 = vpop.xlane.xlu1 %835  ;;  %v3213_v55 = vpop.eup %3212  ;;  %v4721_v48 = vmov 0.0  }
 0x34a   : > { %3222 = vpow2.f32 %v1018_v26  ;;  %v902_v33 = vsub.f32 %v4713_v60, %v836_v23  ;;  %v903_v52 = vsub.f32 %v4714_v8, %v836_v23  ;;  %v1214_v23 = vpop.trf.xlu0 }
 0x34b   : > { %3224 = vpow2.f32 %v1020_v6 }
 0x34c   : > { %v3215_v9 = vpop.eup %3214  ;;  %v1022_v36 = vmul.f32 1.442695, %v902_v33  ;;  %v1024_v61 = vmul.f32 1.442695, %v903_v52 }
 0x34d   : > { %v3217_v50 = vpop.eup %3216  ;;  %v839_v1 = vpop.xlane.xlu1 %838  ;;  %v1062_v28 = vpack.c.bf16 %v3215_v9, %v3211_v59 }
 0x34e   : > { %v904_v51 = vsub.f32 %v4715_v29, %v839_v1  ;;  %v905_v42 = vsub.f32 %v4716_v53, %v839_v1  ;;  %v1063_v31 = vpack.c.bf16 %v3217_v50, %v3213_v55  ;;  %3226 = vpow2.f32 %v1022_v36  ;;  %v1215_v60 = vpop.trf.xlu0 }
 0x34f   : > { %3228 = vpow2.f32 %v1024_v61 }
 0x350   : > { %v1026_v32 = vmul.f32 1.442695, %v904_v51  ;;  %v1028_v13 = vmul.f32 1.442695, %v905_v42  ;;  %1094 = vmatprep.subr.bf16.mxu0 %v1063_v31  ;;  %1137 = vmatprep.subr.bf16.mxu1 %v1063_v31  ;;  %v3219_v7 = vpop.eup %3218 }
 0x351   : > { %1095 = vmatpush1.bf16.xpose.msra.mxu0 %v1062_v28  ;;  %1138 = vmatpush1.bf16.xpose.msra.mxu1 %v1062_v28  ;;  %v842_v62 = vpop.xlane.xlu1 %841  ;;  %v3221_v12 = vpop.eup %3220 }
 0x352   : > { %3230 = vpow2.f32 %v1026_v32  ;;  %v906_v63 = vsub.f32 %v4717_v10, %v842_v62  ;;  %v907_v11 = vsub.f32 %v4718_v39, %v842_v62  ;;  %v1216_v52 = vpop.trf.xlu0 }
 0x353   : > { %3232 = vpow2.f32 %v1028_v13 }
 0x354   : > { %v3223_v16 = vpop.eup %3222  ;;  %v1030_v18 = vmul.f32 1.442695, %v906_v63  ;;  %v1032_v4 = vmul.f32 1.442695, %v907_v11 }
 0x355   : > { %v3225_v58 = vpop.eup %3224  ;;  %v845_v2 = vpop.xlane.xlu1 %844  ;;  %v1064_v34 = vpack.c.bf16 %v3223_v16, %v3219_v7 }
 0x356   : > { %v908_v35 = vsub.f32 %v3827_v0, %v845_v2  ;;  %v909_v15 = vsub.f32 %v4719_v14, %v845_v2  ;;  %v1065_v30 = vpack.c.bf16 %v3225_v58, %v3221_v12  ;;  %3234 = vpow2.f32 %v1030_v18  ;;  %v1217_v9 = vpop.trf.xlu0 }
 0x357   : > { %3236 = vpow2.f32 %v1032_v4  ;;  %v1156_v18 = vlaneseq }
 0x358   : > { %v1034_v37 = vmul.f32 1.442695, %v908_v35  ;;  %v1036_v38 = vmul.f32 1.442695, %v909_v15  ;;  %1096 = vmatprep.subr.bf16.mxu0 %v1065_v30  ;;  %1139 = vmatprep.subr.bf16.mxu1 %v1065_v30  ;;  %v3227_v3 = vpop.eup %3226 }
 0x359   : > { %1097 = vmatpush1.bf16.xpose.msra.mxu0 %v1064_v34  ;;  %1140 = vmatpush1.bf16.xpose.msra.mxu1 %v1064_v34  ;;  %v3229_v22 = vpop.eup %3228  ;;  %v1157_v15 = vshrl.u32 %v1156_v18, 7 }
 0x35a   : > { %3238 = vpow2.f32 %v1034_v37  ;;  %v1218_v61 = vpop.trf.xlu0 }
 0x35b   : > { %3240 = vpow2.f32 %v1036_v38  ;;  %v3979_v30 = vsub.s32 0, %v1157_v15 }
 0x35c   : > { %v3231_v44 = vpop.eup %3230 }
 0x35d   : > { %v3233_v56 = vpop.eup %3232  ;;  %v1066_v57 = vpack.c.bf16 %v3231_v44, %v3227_v3  ;;  %4723 = vst [vmem:[#allocation8_spill] sm:$0xff] %v3979_v30 }
 0x35e   : > { %v1067_v45 = vpack.c.bf16 %v3233_v56, %v3229_v22  ;;  %v1219_v28 = vpop.trf.xlu0 }
 0x360   : > { %1098 = vmatprep.subr.bf16.mxu0 %v1067_v45  ;;  %1141 = vmatprep.subr.bf16.mxu1 %v1067_v45  ;;  %v3235_v0 = vpop.eup %3234 }
 0x361   : > { %1099 = vmatpush1.bf16.xpose.msra.mxu0 %v1066_v57  ;;  %1142 = vmatpush1.bf16.xpose.msra.mxu1 %v1066_v57  ;;  %v3237_v49 = vpop.eup %3236 }
 0x362   : > { %v1220_v53 = vpop.trf.xlu0 }
 0x364   : > { %v3239_v24 = vpop.eup %3238 }
 0x365   : > { %v3241_v47 = vpop.eup %3240  ;;  %v1068_v19 = vpack.c.bf16 %v3239_v24, %v3235_v0 }
 0x366   : > { %v1069_v40 = vpack.c.bf16 %v3241_v47, %v3237_v49  ;;  %v1221_v42 = vpop.trf.xlu0 }
 0x368   : > { %1100 = vmatprep.subr.bf16.mxu0 %v1069_v40  ;;  %1143 = vmatprep.subr.bf16.mxu1 %v1069_v40 }
 0x369   : > { %1101 = vmatpush1.bf16.xpose.msra.mxu0 %v1068_v19  ;;  %1144 = vmatpush1.bf16.xpose.msra.mxu1 %v1068_v19 }
 0x36a   : > { %1326 = vmatprep.subr.mxu0 %v3856_v20  ;;  %v1222_v31 = vpop.trf.xlu0 }
 0x36e   : > { %v1223_v32 = vpop.trf.xlu0 }
 0x370   : > { %1103 = vmatmul.mubr.bf16.vlgmr.msra.gmra.mrb[12].mxu0 %v4671_v54  ;;  %1146 = vmatmul.mubr.bf16.vlgmr.msra.gmra.mrb[64].mxu1 %v1111_v21 }
 0x371   : > { %1327 = vmatpush1.msra.mxu0 %v3852_v27  ;;  %1390 = vmatprep.mubr.f32.mxu0 %v4721_v48 }
 0x372   : > { %1935 = vmatprep.mubr.bf16.mxu1 %v4671_v54  ;;  %v1224_v13 = vpop.trf.xlu0 }
 0x376   : > { %v1225_v62 = vpop.trf.xlu0 }
 0x37a   : > { %v1226_v7 = vpop.trf.xlu0 }
 0x37b   : > { %v1182_v17 = vpop.trf.xlu1 }
 0x37c   : > { %2814 = vmatmul.mubr.msk.f32.vlgmr.msra.gmra.mrb[16].mxu0 %vm396_vm2, %v1182_v17 }
 0x37d   : > { %1396 = vmatprep.mubr.f32.mxu0 %v4721_v48 }
 0x37e   : > { %v1227_v10 = vpop.trf.xlu0 }
 0x37f   : > { %v1183_v43 = vpop.trf.xlu1 }
 0x380   : > { %2815 = vmatmul.mubr.msk.f32.gmra.mrb[18].mxu0 %vm396_vm2, %v1183_v43 }
 0x381   : > { %1402 = vmatprep.mubr.f32.mxu0 %v4721_v48 }
 0x382   : > { %v1228_v63 = vpop.trf.xlu0 }
 0x383   : > { %v1184_v20 = vpop.trf.xlu1 }
 0x384   : > { %2816 = vmatmul.mubr.msk.f32.gmra.mrb[20].mxu0 %vm396_vm2, %v1184_v20 }
 0x385   : > { %1408 = vmatprep.mubr.f32.mxu0 %v4721_v48 }
 0x386   : > { %v1229_v39 = vpop.trf.xlu0 }
 0x387   : > { %v1185_v27 = vpop.trf.xlu1 }
 0x388   : > { %2817 = vmatmul.mubr.msk.f32.gmra.mrb[22].mxu0 %vm396_vm2, %v1185_v27 }
 0x389   : > { %1414 = vmatprep.mubr.f32.mxu0 %v4721_v48 }
 0x38b   : > { %v1186_v46 = vpop.trf.xlu1 }
 0x38c   : > { %2818 = vmatmul.mubr.msk.f32.gmra.mrb[24].mxu0 %vm396_vm2, %v1186_v46 }
 0x38d   : > { %1420 = vmatprep.mubr.f32.mxu0 %v4721_v48 }
 0x38f   : > { %v1187_v5 = vpop.trf.xlu1 }
 0x390   : > { %2819 = vmatmul.mubr.msk.f32.gmra.mrb[26].mxu0 %vm396_vm2, %v1187_v5 }
 0x391   : > { %1426 = vmatprep.mubr.f32.mxu0 %v4721_v48 }
 0x393   : > { %v1188_v25 = vpop.trf.xlu1 }
 0x394   : > { %2820 = vmatmul.mubr.msk.f32.gmra.mrb[28].mxu0 %vm396_vm2, %v1188_v25 }
 0x395   : > { %1432 = vmatprep.mubr.f32.mxu0 %v4721_v48 }
 0x397   : > { %v1189_v26 = vpop.trf.xlu1 }
 0x398   : > { %2821 = vmatmul.mubr.msk.f32.gmra.mrb[30].mxu0 %vm396_vm2, %v1189_v26 }
 0x399   : > { %1438 = vmatprep.mubr.f32.mxu0 %v4721_v48 }
 0x39b   : > { %v1190_v6 = vpop.trf.xlu1 }
 0x39c   : > { %2822 = vmatmul.mubr.msk.f32.gmra.mrb[32].mxu0 %vm396_vm2, %v1190_v6 }
 0x39d   : > { %1444 = vmatprep.mubr.f32.mxu0 %v4721_v48 }
 0x39f   : > { %v1191_v59 = vpop.trf.xlu1 }
 0x3a0   : > { %2823 = vmatmul.mubr.msk.f32.gmra.mrb[34].mxu0 %vm396_vm2, %v1191_v59 }
 0x3a1   : > { %1450 = vmatprep.mubr.f32.mxu0 %v4721_v48 }
 0x3a3   : > { %v1192_v33 = vpop.trf.xlu1 }
 0x3a4   : > { %2824 = vmatmul.mubr.msk.f32.gmra.mrb[36].mxu0 %vm396_vm2, %v1192_v33 }
 0x3a5   : > { %1456 = vmatprep.mubr.f32.mxu0 %v4721_v48 }
 0x3a7   : > { %v1193_v8 = vpop.trf.xlu1 }
 0x3a8   : > { %2825 = vmatmul.mubr.msk.f32.gmra.mrb[38].mxu0 %vm396_vm2, %v1193_v8 }
 0x3a9   : > { %1462 = vmatprep.mubr.f32.mxu0 %v4721_v48 }
 0x3ab   : > { %v1194_v55 = vpop.trf.xlu1 }
 0x3ac   : > { %2826 = vmatmul.mubr.msk.f32.gmra.mrb[40].mxu0 %vm396_vm2, %v1194_v55 }
 0x3ad   : > { %1468 = vmatprep.mubr.f32.mxu0 %v4721_v48 }
 0x3af   : > { %v1195_v36 = vpop.trf.xlu1 }
 0x3b0   : > { %2827 = vmatmul.mubr.msk.f32.gmra.mrb[42].mxu0 %vm396_vm2, %v1195_v36 }
 0x3b1   : > { %1474 = vmatprep.mubr.f32.mxu0 %v4721_v48 }
 0x3b2   : > { %v3948_v29 = vpop.f32.mrb[10].mxu0 }
 0x3b3   : > { %v1196_v50 = vpop.trf.xlu1  ;;  %4722 = vst [vmem:[#allocation7_spill] sm:$0xff] %v3948_v29  ;;  %v329_v51 = vpop.f32.mrb[11].mxu0 }
 0x3b4   : > { %2828 = vmatmul.mubr.msk.f32.gmra.mrb[44].mxu0 %vm396_vm2, %v1196_v50  ;;  %v1945_v11 = vpack.c.bf16 %v329_v51, %v329_v51 }
 0x3b5   : > { %1480 = vmatprep.mubr.f32.mxu0 %v4721_v48 }
 0x3b7   : > { %v1197_v1 = vpop.trf.xlu1 }
 0x3b8   : > { %2829 = vmatmul.mubr.msk.f32.gmra.mrb[46].mxu0 %vm396_vm2, %v1197_v1 }
 0x3b9   : > { %1486 = vmatprep.mubr.f32.mxu0 %v4721_v48 }
 0x3bc   : > { %2830 = vmatmul.mubr.msk.f32.gmra.mrb[48].mxu0 %vm396_vm2, %v1214_v23 }
 0x3bd   : > { %1492 = vmatprep.mubr.f32.mxu0 %v4721_v48 }
 0x3c0   : > { %2831 = vmatmul.mubr.msk.f32.gmra.mrb[50].mxu0 %vm396_vm2, %v1215_v60 }
 0x3c1   : > { %1498 = vmatprep.mubr.f32.mxu0 %v4721_v48 }
 0x3c4   : > { %2832 = vmatmul.mubr.msk.f32.gmra.mrb[52].mxu0 %vm396_vm2, %v1216_v52 }
 0x3c5   : > { %1504 = vmatprep.mubr.f32.mxu0 %v4721_v48 }
 0x3c8   : > { %2833 = vmatmul.mubr.msk.f32.gmra.mrb[54].mxu0 %vm396_vm2, %v1217_v9 }
 0x3c9   : > { %1510 = vmatprep.mubr.f32.mxu0 %v4721_v48 }
 0x3cc   : > { %2834 = vmatmul.mubr.msk.f32.gmra.mrb[56].mxu0 %vm396_vm2, %v1218_v61 }
 0x3cd   : > { %1516 = vmatprep.mubr.f32.mxu0 %v4721_v48 }
 0x3d0   : > { %2835 = vmatmul.mubr.msk.f32.gmra.mrb[58].mxu0 %vm396_vm2, %v1219_v28 }
 0x3d1   : > { %1522 = vmatprep.mubr.f32.mxu0 %v4721_v48 }
 0x3d4   : > { %2836 = vmatmul.mubr.msk.f32.gmra.mrb[60].mxu0 %vm396_vm2, %v1220_v53 }
 0x3d5   : > { %1528 = vmatprep.mubr.f32.mxu0 %v4721_v48 }
 0x3d8   : > { %2837 = vmatmul.mubr.msk.f32.gmra.mrb[62].mxu0 %vm396_vm2, %v1221_v42 }
 0x3d9   : > { %1534 = vmatprep.mubr.f32.mxu0 %v4721_v48 }
 0x3dc   : > { %2838 = vmatmul.mubr.msk.f32.gmra.mrb[64].mxu0 %vm396_vm2, %v1222_v31 }
 0x3dd   : > { %1540 = vmatprep.mubr.f32.mxu0 %v4721_v48 }
 0x3e0   : > { %2839 = vmatmul.mubr.msk.f32.gmra.mrb[66].mxu0 %vm396_vm2, %v1223_v32 }
 0x3e1   : > { %1546 = vmatprep.mubr.f32.mxu0 %v4721_v48 }
 0x3e4   : > { %2840 = vmatmul.mubr.msk.f32.gmra.mrb[68].mxu0 %vm396_vm2, %v1224_v13 }
 0x3e5   : > { %1552 = vmatprep.mubr.f32.mxu0 %v4721_v48 }
 0x3e8   : > { %2841 = vmatmul.mubr.msk.f32.gmra.mrb[70].mxu0 %vm396_vm2, %v1225_v62 }
 0x3e9   : > { %1558 = vmatprep.mubr.f32.mxu0 %v4721_v48 }
 0x3ec   : > { %2842 = vmatmul.mubr.msk.f32.gmra.mrb[72].mxu0 %vm396_vm2, %v1226_v7 }
 0x3ed   : > { %1564 = vmatprep.mubr.f32.mxu0 %v4721_v48 }
 0x3f0   : > { %2843 = vmatmul.mubr.msk.f32.gmra.mrb[74].mxu0 %vm396_vm2, %v1227_v10 }
 0x3f1   : > { %1570 = vmatprep.mubr.f32.mxu0 %v4721_v48 }
 0x3f4   : > { %2844 = vmatmul.mubr.msk.f32.gmra.mrb[76].mxu0 %vm396_vm2, %v1228_v63 }
 0x3f5   : > { %1576 = vmatprep.mubr.f32.mxu0 %v4721_v48 }
 0x3f8   : > { %2845 = vmatmul.mubr.msk.f32.gmra.mrb[78].mxu0 %vm396_vm2, %v1229_v39 }
 0x3f9   : > { %1978 = vmatprep.mubr.bf16.mxu0 %v1945_v11 }
 0x443   : > { %v1104_v12 = vpop.f32.mrb[12].mxu0  ;;  %v1147_v16 = vpop.f32.mrb[64].mxu1 }
 0x444   : > { %3242 = vrcp.f32 %v1104_v12  ;;  %v1106_v58 = vpop.f32.mrb[13].mxu0  ;;  %v1149_v4 = vpop.f32.mrb[65].mxu1 }
 0x445   : > { %3244 = vrcp.f32 %v1106_v58  ;;  %v1151_v2 = vpop.f32.mrb[66].mxu1  ;;  %v1108_v34 = vpop.f32.mrb[14].mxu0 }
 0x446   : > { %v1152_v35 = vpop.f32.mrb[67].mxu1  ;;  %v1109_v14 = vpop.f32.mrb[15].mxu0 }
 0x44e   : > { %v3243_v37 = vpop.eup %3242 }
 0x44f   : > { %v3245_v38 = vpop.eup %3244  ;;  %v1159_v3 = vrot.slane %v3243_v37, %v3979_v30  ;;  %v3982_v22 = vpop.f32.mrb[16].mxu0 }
 0x450   : > { %v1163_v44 = vrot.slane %v3245_v38, %v3979_v30  ;;  %v3985_v56 = vpop.f32.mrb[17].mxu0 }
 0x451   : > { %v1164_v57 = vmul.f32 %v1159_v3, %v1147_v16  ;;  %v1583_v45 = vmax.f32 %v3982_v22, %v3985_v56 }
 0x452   : > { %v1165_v0 = vmul.f32 %v1163_v44, %v1149_v4 }
 0x453   : > { %1999 = vst [vmem:[#allocation2] sm:$0xff] %v1164_v57  ;;  %1584 = vmax.xlane.f32.xlu1 %v1583_v45  ;;  %v3989_v49 = vpop.f32.mrb[18].mxu0 }
 0x454   : > { %2000 = vst [vmem:[#allocation2 + $0x8] sm:$0xff] %v1165_v0  ;;  %v3991_v24 = vpop.f32.mrb[19].mxu0 }
 0x455   : > { %v1586_v47 = vmax.f32 %v3989_v49, %v3991_v24 }
 0x457   : > { %1587 = vmax.xlane.f32.xlu0 %v1586_v47  ;;  %v3995_v19 = vpop.f32.mrb[20].mxu0 }
 0x458   : > { %v3997_v40 = vpop.f32.mrb[21].mxu0 }
 0x459   : > { %v1589_v41 = vmax.f32 %v3995_v19, %v3997_v40 }
 0x45b   : > { %1590 = vmax.xlane.f32.xlu1 %v1589_v41  ;;  %v4001_v21 = vpop.f32.mrb[22].mxu0 }
 0x45c   : > { %v4003_v17 = vpop.f32.mrb[23].mxu0 }
 0x45d   : > { %v1592_v43 = vmax.f32 %v4001_v21, %v4003_v17 }
 0x45f   : > { %1593 = vmax.xlane.f32.xlu1 %v1592_v43  ;;  %v4007_v20 = vpop.f32.mrb[24].mxu0 }
 0x460   : > { %v4009_v27 = vpop.f32.mrb[25].mxu0 }
 0x461   : > { %v1595_v46 = vmax.f32 %v4007_v20, %v4009_v27 }
 0x463   : > { %1596 = vmax.xlane.f32.xlu1 %v1595_v46  ;;  %v4013_v5 = vpop.f32.mrb[26].mxu0 }
 0x464   : > { %v4015_v25 = vpop.f32.mrb[27].mxu0 }
 0x465   : > { %v1598_v26 = vmax.f32 %v4013_v5, %v4015_v25 }
 0x467   : > { %1599 = vmax.xlane.f32.xlu1 %v1598_v26  ;;  %v4019_v6 = vpop.f32.mrb[28].mxu0 }
 0x468   : > { %v4021_v23 = vpop.f32.mrb[29].mxu0 }
 0x469   : > { %v1601_v59 = vmax.f32 %v4019_v6, %v4021_v23 }
 0x46b   : > { %1602 = vmax.xlane.f32.xlu1 %v1601_v59  ;;  %v4025_v60 = vpop.f32.mrb[30].mxu0 }
 0x46c   : > { %v4027_v33 = vpop.f32.mrb[31].mxu0 }
 0x46d   : > { %v1604_v8 = vmax.f32 %v4025_v60, %v4027_v33 }
 0x46f   : > { %1605 = vmax.xlane.f32.xlu1 %v1604_v8  ;;  %v4031_v52 = vpop.f32.mrb[32].mxu0 }
 0x470   : > { %v4033_v55 = vpop.f32.mrb[33].mxu0 }
 0x471   : > { %v1607_v9 = vmax.f32 %v4031_v52, %v4033_v55 }
 0x473   : > { %1608 = vmax.xlane.f32.xlu1 %v1607_v9  ;;  %v4037_v36 = vpop.f32.mrb[34].mxu0 }
 0x474   : > { %v4039_v50 = vpop.f32.mrb[35].mxu0 }
 0x475   : > { %v1610_v61 = vmax.f32 %v4037_v36, %v4039_v50 }
 0x477   : > { %1611 = vmax.xlane.f32.xlu1 %v1610_v61  ;;  %v4043_v1 = vpop.f32.mrb[36].mxu0 }
 0x478   : > { %v4045_v28 = vpop.f32.mrb[37].mxu0 }
 0x479   : > { %v1613_v51 = vmax.f32 %v4043_v1, %v4045_v28 }
 0x47b   : > { %1614 = vmax.xlane.f32.xlu1 %v1613_v51  ;;  %v4049_v53 = vpop.f32.mrb[38].mxu0 }
 0x47c   : > { %v4051_v42 = vpop.f32.mrb[39].mxu0 }
 0x47d   : > { %v1616_v31 = vmax.f32 %v4049_v53, %v4051_v42 }
 0x47f   : > { %1617 = vmax.xlane.f32.xlu1 %v1616_v31  ;;  %v4055_v32 = vpop.f32.mrb[40].mxu0 }
 0x480   : > { %v4057_v13 = vpop.f32.mrb[41].mxu0 }
 0x481   : > { %v1619_v62 = vmax.f32 %v4055_v32, %v4057_v13 }
 0x483   : > { %1620 = vmax.xlane.f32.xlu1 %v1619_v62  ;;  %v4061_v7 = vpop.f32.mrb[42].mxu0 }
 0x484   : > { %v4063_v10 = vpop.f32.mrb[43].mxu0 }
 0x485   : > { %v1622_v63 = vmax.f32 %v4061_v7, %v4063_v10 }
 0x487   : > { %1623 = vmax.xlane.f32.xlu1 %v1622_v63  ;;  %v4067_v39 = vpop.f32.mrb[44].mxu0 }
 0x488   : > { %v4069_v11 = vpop.f32.mrb[45].mxu0 }
 0x489   : > { %v1625_v12 = vmax.f32 %v4067_v39, %v4069_v11 }
 0x48b   : > { %1626 = vmax.xlane.f32.xlu0 %v1625_v12  ;;  %v4073_v16 = vpop.f32.mrb[46].mxu0 }
 0x48c   : > { %v4075_v18 = vpop.f32.mrb[47].mxu0 }
 0x48d   : > { %v1628_v58 = vmax.f32 %v4073_v16, %v4075_v18 }
 0x48f   : > { %1629 = vmax.xlane.f32.xlu1 %v1628_v58  ;;  %v4079_v4 = vpop.f32.mrb[48].mxu0 }
 0x490   : > { %v4081_v2 = vpop.f32.mrb[49].mxu0 }
 0x491   : > { %v1631_v34 = vmax.f32 %v4079_v4, %v4081_v2 }
 0x493   : > { %1632 = vmax.xlane.f32.xlu0 %v1631_v34  ;;  %v4085_v35 = vpop.f32.mrb[50].mxu0 }
 0x494   : > { %v4087_v14 = vpop.f32.mrb[51].mxu0 }
 0x495   : > { %v1634_v15 = vmax.f32 %v4085_v35, %v4087_v14 }
 0x497   : > { %1635 = vmax.xlane.f32.xlu1 %v1634_v15  ;;  %v4091_v37 = vpop.f32.mrb[52].mxu0 }
 0x498   : > { %v4093_v38 = vpop.f32.mrb[53].mxu0 }
 0x499   : > { %v1637_v3 = vmax.f32 %v4091_v37, %v4093_v38 }
 0x49b   : > { %1638 = vmax.xlane.f32.xlu0 %v1637_v3  ;;  %v4097_v44 = vpop.f32.mrb[54].mxu0 }
 0x49c   : > { %v4099_v57 = vpop.f32.mrb[55].mxu0 }
 0x49d   : > { %v1640_v45 = vmax.f32 %v4097_v44, %v4099_v57 }
 0x49f   : > { %1641 = vmax.xlane.f32.xlu1 %v1640_v45  ;;  %v4103_v0 = vpop.f32.mrb[56].mxu0 }
 0x4a0   : > { %v4105_v47 = vpop.f32.mrb[57].mxu0 }
 0x4a1   : > { %v1643_v41 = vmax.f32 %v4103_v0, %v4105_v47 }
 0x4a3   : > { %1644 = vmax.xlane.f32.xlu0 %v1643_v41  ;;  %v4109_v43 = vpop.f32.mrb[58].mxu0 }
 0x4a4   : > { %v4111_v46 = vpop.f32.mrb[59].mxu0 }
 0x4a5   : > { %v1646_v26 = vmax.f32 %v4109_v43, %v4111_v46 }
 0x4a7   : > { %1647 = vmax.xlane.f32.xlu1 %v1646_v26  ;;  %v4115_v59 = vpop.f32.mrb[60].mxu0 }
 0x4a8   : > { %v4117_v8 = vpop.f32.mrb[61].mxu0 }
 0x4a9   : > { %v1649_v9 = vmax.f32 %v4115_v59, %v4117_v8 }
 0x4ab   : > { %1650 = vmax.xlane.f32.xlu0 %v1649_v9  ;;  %v4121_v61 = vpop.f32.mrb[62].mxu0 }
 0x4ac   : > { %v4123_v51 = vpop.f32.mrb[63].mxu0 }
 0x4ad   : > { %v1652_v31 = vmax.f32 %v4121_v61, %v4123_v51 }
 0x4af   : > { %1653 = vmax.xlane.f32.xlu1 %v1652_v31  ;;  %v4127_v62 = vpop.f32.mrb[64].mxu0 }
 0x4b0   : > { %v4129_v63 = vpop.f32.mrb[65].mxu0 }
 0x4b1   : > { %v1655_v12 = vmax.f32 %v4127_v62, %v4129_v63 }
 0x4b3   : > { %1656 = vmax.xlane.f32.xlu0 %v1655_v12  ;;  %v4133_v58 = vpop.f32.mrb[66].mxu0 }
 0x4b4   : > { %4724 = vst [vmem:[#allocation9_spill] sm:$0xff] %v4133_v58  ;;  %v4135_v34 = vpop.f32.mrb[67].mxu0 }
 0x4b5   : > { %4725 = vst [vmem:[#allocation10_spill] sm:$0xff] %v4135_v34  ;;  %v1658_v15 = vmax.f32 %v4133_v58, %v4135_v34 }
 0x4b7   : > { %1659 = vmax.xlane.f32.xlu1 %v1658_v15  ;;  %v4139_v3 = vpop.f32.mrb[68].mxu0 }
 0x4b8   : > { %4726 = vst [vmem:[#allocation11_spill] sm:$0xff] %v4139_v3  ;;  %v4141_v45 = vpop.f32.mrb[69].mxu0 }
 0x4b9   : > { %4727 = vst [vmem:[#allocation12_spill] sm:$0xff] %v4141_v45  ;;  %v1661_v41 = vmax.f32 %v4139_v3, %v4141_v45 }
 0x4bb   : > { %1662 = vmax.xlane.f32.xlu0 %v1661_v41  ;;  %v4145_v26 = vpop.f32.mrb[70].mxu0 }
 0x4bc   : > { %4728 = vst [vmem:[#allocation13_spill] sm:$0xff] %v4145_v26  ;;  %v4147_v9 = vpop.f32.mrb[71].mxu0 }
 0x4bd   : > { %4729 = vst [vmem:[#allocation14_spill] sm:$0xff] %v4147_v9  ;;  %v1664_v31 = vmax.f32 %v4145_v26, %v4147_v9 }
 0x4bf   : > { %1665 = vmax.xlane.f32.xlu1 %v1664_v31  ;;  %v4151_v12 = vpop.f32.mrb[72].mxu0 }
 0x4c0   : > { %4730 = vst [vmem:[#allocation15_spill] sm:$0xff] %v4151_v12  ;;  %v4153_v54 = vpop.f32.mrb[73].mxu0 }
 0x4c1   : > { %4731 = vst [vmem:[#allocation16_spill] sm:$0xff] %v4153_v54  ;;  %v1667_v15 = vmax.f32 %v4151_v12, %v4153_v54 }
 0x4c3   : > { %1668 = vmax.xlane.f32.xlu0 %v1667_v15  ;;  %v4157_v30 = vpop.f32.mrb[74].mxu0 }
 0x4c4   : > { %4732 = vst [vmem:[#allocation17_spill] sm:$0xff] %v4157_v30  ;;  %v4159_v48 = vpop.f32.mrb[75].mxu0 }
 0x4c5   : > { %4733 = vst [vmem:[#allocation18_spill] sm:$0xff] %v4159_v48  ;;  %v1670_v41 = vmax.f32 %v4157_v30, %v4159_v48 }
 0x4c7   : > { %1671 = vmax.xlane.f32.xlu1 %v1670_v41  ;;  %v4163_v29 = vpop.f32.mrb[76].mxu0 }
 0x4c8   : > { %4734 = vst [vmem:[#allocation19_spill] sm:$0xff] %v4163_v29  ;;  %v4165_v9 = vpop.f32.mrb[77].mxu0 }
 0x4c9   : > { %4735 = vst [vmem:[#allocation20_spill] sm:$0xff] %v4165_v9  ;;  %v1673_v31 = vmax.f32 %v4163_v29, %v4165_v9 }
 0x4cb   : > { %1674 = vmax.xlane.f32.xlu0 %v1673_v31  ;;  %v4169_v26 = vpop.f32.mrb[78].mxu0 }
 0x4cc   : > { %v4171_v54 = vpop.f32.mrb[79].mxu0 }
 0x4cd   : > { %4736 = vst [vmem:[#allocation6_spill] sm:$0xff] %v4171_v54  ;;  %v1676_v15 = vmax.f32 %v4169_v26, %v4171_v54 }
 0x4cf   : > { %1677 = vmax.xlane.f32.xlu1 %v1676_v15 }
 0x4e0   : > { %v1585_v12 = vpop.xlane.xlu1 %1584 }
 0x4e1   : > { %v1679_v48 = vsub.f32 %v3982_v22, %v1585_v12  ;;  %v1680_v41 = vsub.f32 %v3985_v56, %v1585_v12 }
 0x4e3   : > { %v1743_v30 = vmul.f32 1.442695, %v1679_v48  ;;  %v1745_v45 = vmul.f32 1.442695, %v1680_v41 }
 0x4e4   : > { %v1588_v3 = vpop.xlane.xlu0 %1587 }
 0x4e5   : > { %v1681_v34 = vsub.f32 %v3989_v49, %v1588_v3  ;;  %v1682_v31 = vsub.f32 %v3991_v24, %v1588_v3  ;;  %3246 = vpow2.f32 %v1743_v30 }
 0x4e6   : > { %3248 = vpow2.f32 %v1745_v45 }
 0x4e7   : > { %v1747_v9 = vmul.f32 1.442695, %v1681_v34  ;;  %v1749_v29 = vmul.f32 1.442695, %v1682_v31 }
 0x4e8   : > { %v1591_v58 = vpop.xlane.xlu1 %1590 }
 0x4e9   : > { %3250 = vpow2.f32 %v1747_v9  ;;  %v1683_v15 = vsub.f32 %v3995_v19, %v1591_v58  ;;  %v1684_v54 = vsub.f32 %v3997_v40, %v1591_v58 }
 0x4ea   : > { %3252 = vpow2.f32 %v1749_v29 }
 0x4eb   : > { %v1751_v22 = vmul.f32 1.442695, %v1683_v15  ;;  %v1753_v56 = vmul.f32 1.442695, %v1684_v54 }
 0x4ec   : > { %v1594_v48 = vpop.xlane.xlu1 %1593 }
 0x4ed   : > { %v1685_v12 = vsub.f32 %v4001_v21, %v1594_v48  ;;  %v1686_v49 = vsub.f32 %v4003_v17, %v1594_v48  ;;  %3254 = vpow2.f32 %v1751_v22 }
 0x4ee   : > { %3256 = vpow2.f32 %v1753_v56 }
 0x4ef   : > { %v1755_v24 = vmul.f32 1.442695, %v1685_v12  ;;  %v1757_v30 = vmul.f32 1.442695, %v1686_v49  ;;  %v3247_v3 = vpop.eup %3246 }
 0x4f0   : > { %v1597_v34 = vpop.xlane.xlu1 %1596  ;;  %v3249_v40 = vpop.eup %3248 }
 0x4f1   : > { %3258 = vpow2.f32 %v1755_v24  ;;  %v1687_v45 = vsub.f32 %v4007_v20, %v1597_v34  ;;  %v1688_v19 = vsub.f32 %v4009_v27, %v1597_v34 }
 0x4f2   : > { %3260 = vpow2.f32 %v1757_v30 }
 0x4f3   : > { %v3251_v29 = vpop.eup %3250  ;;  %v1759_v54 = vmul.f32 1.442695, %v1687_v45  ;;  %v1761_v9 = vmul.f32 1.442695, %v1688_v19 }
 0x4f4   : > { %v3253_v58 = vpop.eup %3252  ;;  %v1600_v21 = vpop.xlane.xlu1 %1599  ;;  %v1871_v41 = vpack.c.bf16 %v3251_v29, %v3247_v3 }
 0x4f5   : > { %v1689_v17 = vsub.f32 %v4013_v5, %v1600_v21  ;;  %v1690_v31 = vsub.f32 %v4015_v25, %v1600_v21  ;;  %v1872_v15 = vpack.c.bf16 %v3253_v58, %v3249_v40  ;;  %3262 = vpow2.f32 %v1759_v54 }
 0x4f6   : > { %3264 = vpow2.f32 %v1761_v9 }
 0x4f7   : > { %v1763_v22 = vmul.f32 1.442695, %v1689_v17  ;;  %v1765_v56 = vmul.f32 1.442695, %v1690_v31  ;;  %1903 = vmatprep.subr.bf16.mxu1 %v1872_v15  ;;  %1946 = vmatprep.subr.bf16.mxu0 %v1872_v15  ;;  %v3255_v27 = vpop.eup %3254 }
 0x4f8   : > { %1904 = vmatpush1.bf16.xpose.msra.mxu1 %v1871_v41  ;;  %1947 = vmatpush1.bf16.xpose.msra.mxu0 %v1871_v41  ;;  %v1603_v20 = vpop.xlane.xlu1 %1602  ;;  %v3257_v49 = vpop.eup %3256 }
 0x4f9   : > { %3266 = vpow2.f32 %v1763_v22  ;;  %v1691_v48 = vsub.f32 %v4019_v6, %v1603_v20  ;;  %v1692_v12 = vsub.f32 %v4021_v23, %v1603_v20 }
 0x4fa   : > { %3268 = vpow2.f32 %v1765_v56 }
 0x4fb   : > { %v3259_v5 = vpop.eup %3258  ;;  %v1767_v25 = vmul.f32 1.442695, %v1691_v48  ;;  %v1769_v30 = vmul.f32 1.442695, %v1692_v12 }
 0x4fc   : > { %v3261_v24 = vpop.eup %3260  ;;  %v1606_v34 = vpop.xlane.xlu1 %1605  ;;  %v1873_v3 = vpack.c.bf16 %v3259_v5, %v3255_v27 }
 0x4fd   : > { %v1693_v45 = vsub.f32 %v4025_v60, %v1606_v34  ;;  %v1694_v19 = vsub.f32 %v4027_v33, %v1606_v34  ;;  %v1874_v40 = vpack.c.bf16 %v3261_v24, %v3257_v49  ;;  %3270 = vpow2.f32 %v1767_v25 }
 0x4fe   : > { %3272 = vpow2.f32 %v1769_v30 }
 0x4ff   : > { %v1771_v29 = vmul.f32 1.442695, %v1693_v45  ;;  %v1773_v54 = vmul.f32 1.442695, %v1694_v19  ;;  %1905 = vmatprep.subr.bf16.mxu1 %v1874_v40  ;;  %1948 = vmatprep.subr.bf16.mxu0 %v1874_v40  ;;  %v3263_v23 = vpop.eup %3262 }
 0x500   : > { %1906 = vmatpush1.bf16.xpose.msra.mxu1 %v1873_v3  ;;  %1949 = vmatpush1.bf16.xpose.msra.mxu0 %v1873_v3  ;;  %v1609_v6 = vpop.xlane.xlu1 %1608  ;;  %v3265_v21 = vpop.eup %3264 }
 0x501   : > { %3274 = vpow2.f32 %v1771_v29  ;;  %v1695_v58 = vsub.f32 %v4031_v52, %v1609_v6  ;;  %v1696_v9 = vsub.f32 %v4033_v55, %v1609_v6 }
 0x502   : > { %3276 = vpow2.f32 %v1773_v54 }
 0x503   : > { %v3267_v60 = vpop.eup %3266  ;;  %v1775_v33 = vmul.f32 1.442695, %v1695_v58  ;;  %v1777_v17 = vmul.f32 1.442695, %v1696_v9 }
 0x504   : > { %v3269_v41 = vpop.eup %3268  ;;  %v1612_v31 = vpop.xlane.xlu1 %1611  ;;  %v1875_v15 = vpack.c.bf16 %v3267_v60, %v3263_v23 }
 0x505   : > { %v1697_v22 = vsub.f32 %v4037_v36, %v1612_v31  ;;  %v1698_v56 = vsub.f32 %v4039_v50, %v1612_v31  ;;  %v1876_v20 = vpack.c.bf16 %v3269_v41, %v3265_v21  ;;  %3278 = vpow2.f32 %v1775_v33 }
 0x506   : > { %3280 = vpow2.f32 %v1777_v17 }
 0x507   : > { %v1779_v27 = vmul.f32 1.442695, %v1697_v22  ;;  %v1781_v48 = vmul.f32 1.442695, %v1698_v56  ;;  %1907 = vmatprep.subr.bf16.mxu1 %v1876_v20  ;;  %1950 = vmatprep.subr.bf16.mxu0 %v1876_v20  ;;  %v3271_v55 = vpop.eup %3270 }
 0x508   : > { %1908 = vmatpush1.bf16.xpose.msra.mxu1 %v1875_v15  ;;  %1951 = vmatpush1.bf16.xpose.msra.mxu0 %v1875_v15  ;;  %v1615_v52 = vpop.xlane.xlu1 %1614  ;;  %v3273_v5 = vpop.eup %3272 }
 0x509   : > { %3282 = vpow2.f32 %v1779_v27  ;;  %v1699_v12 = vsub.f32 %v4043_v1, %v1615_v52  ;;  %v1700_v49 = vsub.f32 %v4045_v28, %v1615_v52 }
 0x50a   : > { %3284 = vpow2.f32 %v1781_v48 }
 0x50b   : > { %v3275_v36 = vpop.eup %3274  ;;  %v1783_v50 = vmul.f32 1.442695, %v1699_v12  ;;  %v1785_v24 = vmul.f32 1.442695, %v1700_v49 }
 0x50c   : > { %v3277_v25 = vpop.eup %3276  ;;  %v1618_v30 = vpop.xlane.xlu1 %1617  ;;  %v1877_v34 = vpack.c.bf16 %v3275_v36, %v3271_v55 }
 0x50d   : > { %v1701_v3 = vsub.f32 %v4049_v53, %v1618_v30  ;;  %v1702_v45 = vsub.f32 %v4051_v42, %v1618_v30  ;;  %v1878_v19 = vpack.c.bf16 %v3277_v25, %v3273_v5  ;;  %3286 = vpow2.f32 %v1783_v50 }
 0x50e   : > { %3288 = vpow2.f32 %v1785_v24 }
 0x50f   : > { %v1787_v40 = vmul.f32 1.442695, %v1701_v3  ;;  %v1789_v29 = vmul.f32 1.442695, %v1702_v45  ;;  %1909 = vmatprep.subr.bf16.mxu1 %v1878_v19  ;;  %1952 = vmatprep.subr.bf16.mxu0 %v1878_v19  ;;  %v3279_v28 = vpop.eup %3278 }
 0x510   : > { %1910 = vmatpush1.bf16.xpose.msra.mxu1 %v1877_v34  ;;  %1953 = vmatpush1.bf16.xpose.msra.mxu0 %v1877_v34  ;;  %v1621_v1 = vpop.xlane.xlu1 %1620  ;;  %v3281_v23 = vpop.eup %3280 }
 0x511   : > { %3290 = vpow2.f32 %v1787_v40  ;;  %v1703_v54 = vsub.f32 %v4055_v32, %v1621_v1  ;;  %v1704_v6 = vsub.f32 %v4057_v13, %v1621_v1 }
 0x512   : > { %3292 = vpow2.f32 %v1789_v29 }
 0x513   : > { %v3283_v53 = vpop.eup %3282  ;;  %v1791_v42 = vmul.f32 1.442695, %v1703_v54  ;;  %v1793_v9 = vmul.f32 1.442695, %v1704_v6 }
 0x514   : > { %v3285_v58 = vpop.eup %3284  ;;  %v1624_v21 = vpop.xlane.xlu1 %1623  ;;  %v1879_v60 = vpack.c.bf16 %v3283_v53, %v3279_v28 }
 0x515   : > { %v1705_v33 = vsub.f32 %v4061_v7, %v1624_v21  ;;  %v1706_v41 = vsub.f32 %v4063_v10, %v1624_v21  ;;  %v1880_v17 = vpack.c.bf16 %v3285_v58, %v3281_v23  ;;  %3294 = vpow2.f32 %v1791_v42 }
 0x516   : > { %3296 = vpow2.f32 %v1793_v9 }
 0x517   : > { %v1795_v31 = vmul.f32 1.442695, %v1705_v33  ;;  %v1797_v15 = vmul.f32 1.442695, %v1706_v41  ;;  %1911 = vmatprep.subr.bf16.mxu1 %v1880_v17  ;;  %1954 = vmatprep.subr.bf16.mxu0 %v1880_v17  ;;  %v3287_v13 = vpop.eup %3286 }
 0x518   : > { %1912 = vmatpush1.bf16.xpose.msra.mxu1 %v1879_v60  ;;  %1955 = vmatpush1.bf16.xpose.msra.mxu0 %v1879_v60  ;;  %v1627_v32 = vpop.xlane.xlu0 %1626  ;;  %v3289_v20 = vpop.eup %3288 }
 0x519   : > { %3298 = vpow2.f32 %v1795_v31  ;;  %v1707_v22 = vsub.f32 %v4067_v39, %v1627_v32  ;;  %v1708_v56 = vsub.f32 %v4069_v11, %v1627_v32 }
 0x51a   : > { %3300 = vpow2.f32 %v1797_v15 }
 0x51b   : > { %v3291_v7 = vpop.eup %3290  ;;  %v1799_v10 = vmul.f32 1.442695, %v1707_v22  ;;  %v1801_v48 = vmul.f32 1.442695, %v1708_v56 }
 0x51c   : > { %v3293_v27 = vpop.eup %3292  ;;  %v1630_v52 = vpop.xlane.xlu1 %1629  ;;  %v1881_v55 = vpack.c.bf16 %v3291_v7, %v3287_v13 }
 0x51d   : > { %v1709_v12 = vsub.f32 %v4073_v16, %v1630_v52  ;;  %v1710_v49 = vsub.f32 %v4075_v18, %v1630_v52  ;;  %v1882_v5 = vpack.c.bf16 %v3293_v27, %v3289_v20  ;;  %3302 = vpow2.f32 %v1799_v10 }
 0x51e   : > { %3304 = vpow2.f32 %v1801_v48 }
 0x51f   : > { %v1803_v36 = vmul.f32 1.442695, %v1709_v12  ;;  %v1805_v50 = vmul.f32 1.442695, %v1710_v49  ;;  %1913 = vmatprep.subr.bf16.mxu1 %v1882_v5  ;;  %1956 = vmatprep.subr.bf16.mxu0 %v1882_v5  ;;  %v3295_v11 = vpop.eup %3294 }
 0x520   : > { %1914 = vmatpush1.bf16.xpose.msra.mxu1 %v1881_v55  ;;  %1957 = vmatpush1.bf16.xpose.msra.mxu0 %v1881_v55  ;;  %v1633_v39 = vpop.xlane.xlu0 %1632  ;;  %v3297_v30 = vpop.eup %3296 }
 0x521   : > { %3306 = vpow2.f32 %v1803_v36  ;;  %v1711_v25 = vsub.f32 %v4079_v4, %v1633_v39  ;;  %v1712_v24 = vsub.f32 %v4081_v2, %v1633_v39 }
 0x522   : > { %3308 = vpow2.f32 %v1805_v50 }
 0x523   : > { %v3299_v16 = vpop.eup %3298  ;;  %v1807_v18 = vmul.f32 1.442695, %v1711_v25  ;;  %v1809_v3 = vmul.f32 1.442695, %v1712_v24 }
 0x524   : > { %v3301_v34 = vpop.eup %3300  ;;  %v1636_v45 = vpop.xlane.xlu1 %1635  ;;  %v1883_v19 = vpack.c.bf16 %v3299_v16, %v3295_v11 }
 0x525   : > { %v1713_v40 = vsub.f32 %v4085_v35, %v1636_v45  ;;  %v1714_v29 = vsub.f32 %v4087_v14, %v1636_v45  ;;  %v1884_v1 = vpack.c.bf16 %v3301_v34, %v3297_v30  ;;  %3310 = vpow2.f32 %v1807_v18 }
 0x526   : > { %3312 = vpow2.f32 %v1809_v3 }
 0x527   : > { %v1811_v28 = vmul.f32 1.442695, %v1713_v40  ;;  %v1813_v54 = vmul.f32 1.442695, %v1714_v29  ;;  %1915 = vmatprep.subr.bf16.mxu1 %v1884_v1  ;;  %1958 = vmatprep.subr.bf16.mxu0 %v1884_v1  ;;  %v3303_v2 = vpop.eup %3302 }
 0x528   : > { %1916 = vmatpush1.bf16.xpose.msra.mxu1 %v1883_v19  ;;  %1959 = vmatpush1.bf16.xpose.msra.mxu0 %v1883_v19  ;;  %v1639_v4 = vpop.xlane.xlu0 %1638  ;;  %v3305_v53 = vpop.eup %3304 }
 0x529   : > { %3314 = vpow2.f32 %v1811_v28  ;;  %v1715_v6 = vsub.f32 %v4091_v37, %v1639_v4  ;;  %v1716_v23 = vsub.f32 %v4093_v38, %v1639_v4  ;;  %v4737_v28 = vld [vmem:[#allocation9_spill] sm:$0xff]  ;;  %v4738_v4 = vld [vmem:[#allocation10_spill] sm:$0xff] }
 0x52a   : > { %3316 = vpow2.f32 %v1813_v54 }
 0x52b   : > { %v3307_v35 = vpop.eup %3306  ;;  %v1815_v14 = vmul.f32 1.442695, %v1715_v6  ;;  %v1817_v58 = vmul.f32 1.442695, %v1716_v23 }
 0x52c   : > { %v3309_v42 = vpop.eup %3308  ;;  %v1642_v9 = vpop.xlane.xlu1 %1641  ;;  %v1885_v21 = vpack.c.bf16 %v3307_v35, %v3303_v2  ;;  %v4739_v35 = vld [vmem:[#allocation11_spill] sm:$0xff] }
 0x52d   : > { %v1717_v60 = vsub.f32 %v4097_v44, %v1642_v9  ;;  %v1718_v33 = vsub.f32 %v4099_v57, %v1642_v9  ;;  %v1886_v41 = vpack.c.bf16 %v3309_v42, %v3305_v53  ;;  %3318 = vpow2.f32 %v1815_v14  ;;  %v4740_v42 = vld [vmem:[#allocation12_spill] sm:$0xff] }
 0x52e   : > { %3320 = vpow2.f32 %v1817_v58 }
 0x52f   : > { %v1819_v17 = vmul.f32 1.442695, %v1717_v60  ;;  %v1821_v31 = vmul.f32 1.442695, %v1718_v33  ;;  %1917 = vmatprep.subr.bf16.mxu1 %v1886_v41  ;;  %1960 = vmatprep.subr.bf16.mxu0 %v1886_v41  ;;  %v3311_v38 = vpop.eup %3310 }
 0x530   : > { %1918 = vmatpush1.bf16.xpose.msra.mxu1 %v1885_v21  ;;  %1961 = vmatpush1.bf16.xpose.msra.mxu0 %v1885_v21  ;;  %v1645_v37 = vpop.xlane.xlu0 %1644  ;;  %v3313_v13 = vpop.eup %3312 }
 0x531   : > { %3322 = vpow2.f32 %v1819_v17  ;;  %v1719_v15 = vsub.f32 %v4103_v0, %v1645_v37  ;;  %v1720_v32 = vsub.f32 %v4105_v47, %v1645_v37  ;;  %v4741_v37 = vld [vmem:[#allocation13_spill] sm:$0xff] }
 0x532   : > { %3324 = vpow2.f32 %v1821_v31 }
 0x533   : > { %v3315_v44 = vpop.eup %3314  ;;  %v1823_v57 = vmul.f32 1.442695, %v1719_v15  ;;  %v1825_v56 = vmul.f32 1.442695, %v1720_v32  ;;  %v4742_v15 = vld [vmem:[#allocation14_spill] sm:$0xff] }
 0x534   : > { %v3317_v22 = vpop.eup %3316  ;;  %v1648_v20 = vpop.xlane.xlu1 %1647  ;;  %v1887_v7 = vpack.c.bf16 %v3315_v44, %v3311_v38 }
 0x535   : > { %v1721_v10 = vsub.f32 %v4109_v43, %v1648_v20  ;;  %v1722_v27 = vsub.f32 %v4111_v46, %v1648_v20  ;;  %v1888_v48 = vpack.c.bf16 %v3317_v22, %v3313_v13  ;;  %3326 = vpow2.f32 %v1823_v57  ;;  %v4743_v20 = vld [vmem:[#allocation15_spill] sm:$0xff] }
 0x536   : > { %3328 = vpow2.f32 %v1825_v56 }
 0x537   : > { %v1827_v52 = vmul.f32 1.442695, %v1721_v10  ;;  %v1829_v55 = vmul.f32 1.442695, %v1722_v27  ;;  %1919 = vmatprep.subr.bf16.mxu1 %v1888_v48  ;;  %1962 = vmatprep.subr.bf16.mxu0 %v1888_v48  ;;  %v3319_v47 = vpop.eup %3318  ;;  %v4744_v10 = vld [vmem:[#allocation16_spill] sm:$0xff] }
 0x538   : > { %1920 = vmatpush1.bf16.xpose.msra.mxu1 %v1887_v7  ;;  %1963 = vmatpush1.bf16.xpose.msra.mxu0 %v1887_v7  ;;  %v1651_v0 = vpop.xlane.xlu0 %1650  ;;  %v3321_v5 = vpop.eup %3320 }
 0x539   : > { %3330 = vpow2.f32 %v1827_v52  ;;  %v1723_v12 = vsub.f32 %v4115_v59, %v1651_v0  ;;  %v1724_v49 = vsub.f32 %v4117_v8, %v1651_v0 }
 0x53a   : > { %3332 = vpow2.f32 %v1829_v55 }
 0x53b   : > { %v3323_v43 = vpop.eup %3322  ;;  %v1831_v46 = vmul.f32 1.442695, %v1723_v12  ;;  %v1833_v50 = vmul.f32 1.442695, %v1724_v49 }
 0x53c   : > { %v3325_v36 = vpop.eup %3324  ;;  %v1654_v39 = vpop.xlane.xlu1 %1653  ;;  %v1889_v11 = vpack.c.bf16 %v3323_v43, %v3319_v47 }
 0x53d   : > { %v1725_v25 = vsub.f32 %v4121_v61, %v1654_v39  ;;  %v1726_v24 = vsub.f32 %v4123_v51, %v1654_v39  ;;  %v1890_v30 = vpack.c.bf16 %v3325_v36, %v3321_v5  ;;  %3334 = vpow2.f32 %v1831_v46  ;;  %v4745_v5 = vld [vmem:[#allocation17_spill] sm:$0xff]  ;;  %v4746_v46 = vld [vmem:[#allocation18_spill] sm:$0xff] }
 0x53e   : > { %3336 = vpow2.f32 %v1833_v50 }
 0x53f   : > { %v1835_v16 = vmul.f32 1.442695, %v1725_v25  ;;  %v1837_v18 = vmul.f32 1.442695, %v1726_v24  ;;  %1921 = vmatprep.subr.bf16.mxu1 %v1890_v30  ;;  %1964 = vmatprep.subr.bf16.mxu0 %v1890_v30  ;;  %v3327_v8 = vpop.eup %3326  ;;  %v4747_v30 = vld [vmem:[#allocation19_spill] sm:$0xff] }
 0x540   : > { %1922 = vmatpush1.bf16.xpose.msra.mxu1 %v1889_v11  ;;  %1965 = vmatpush1.bf16.xpose.msra.mxu0 %v1889_v11  ;;  %v1657_v59 = vpop.xlane.xlu0 %1656  ;;  %v3329_v45 = vpop.eup %3328 }
 0x541   : > { %3338 = vpow2.f32 %v1835_v16  ;;  %v1727_v34 = vsub.f32 %v4127_v62, %v1657_v59  ;;  %v1728_v3 = vsub.f32 %v4129_v63, %v1657_v59 }
 0x542   : > { %3340 = vpow2.f32 %v1837_v18  ;;  %v4748_v18 = vld [vmem:[#allocation20_spill] sm:$0xff] }
 0x543   : > { %v3331_v61 = vpop.eup %3330  ;;  %v1839_v51 = vmul.f32 1.442695, %v1727_v34  ;;  %v1841_v40 = vmul.f32 1.442695, %v1728_v3 }
 0x544   : > { %v3333_v19 = vpop.eup %3332  ;;  %v1660_v29 = vpop.xlane.xlu1 %1659  ;;  %v1891_v1 = vpack.c.bf16 %v3331_v61, %v3327_v8 }
 0x545   : > { %v1729_v54 = vsub.f32 %v4737_v28, %v1660_v29  ;;  %v1730_v2 = vsub.f32 %v4738_v4, %v1660_v29  ;;  %v1892_v6 = vpack.c.bf16 %v3333_v19, %v3329_v45  ;;  %3342 = vpow2.f32 %v1839_v51  ;;  %v4749_v29 = vld [vmem:[#allocation6_spill] sm:$0xff] }
 0x546   : > { %3344 = vpow2.f32 %v1841_v40 }
 0x547   : > { %v1843_v23 = vmul.f32 1.442695, %v1729_v54  ;;  %v1845_v53 = vmul.f32 1.442695, %v1730_v2  ;;  %1923 = vmatprep.subr.bf16.mxu1 %v1892_v6  ;;  %1966 = vmatprep.subr.bf16.mxu0 %v1892_v6  ;;  %v3335_v63 = vpop.eup %3334 }
 0x548   : > { %1924 = vmatpush1.bf16.xpose.msra.mxu1 %v1891_v1  ;;  %1967 = vmatpush1.bf16.xpose.msra.mxu0 %v1891_v1  ;;  %v1663_v62 = vpop.xlane.xlu0 %1662  ;;  %v3337_v9 = vpop.eup %3336 }
 0x549   : > { %3346 = vpow2.f32 %v1843_v23  ;;  %v1731_v14 = vsub.f32 %v4739_v35, %v1663_v62  ;;  %v1732_v58 = vsub.f32 %v4740_v42, %v1663_v62  ;;  %v2008_v35 = vld [vmem:[%s4652_s2 + $0x8] sm:$0xff]  ;;  %v2011_v42 = vld [vmem:[%s4652_s2 + $0x20] sm:$0xff] }
 0x54a   : > { %3348 = vpow2.f32 %v1845_v53 }
 0x54b   : > { %v3339_v21 = vpop.eup %3338  ;;  %v1847_v60 = vmul.f32 1.442695, %v1731_v14  ;;  %v1849_v41 = vmul.f32 1.442695, %v1732_v58  ;;  %v2057_v58 = vld [vmem:[%s4652_s2 + $0x190] sm:$0xff] }
 0x54c   : > { %v3341_v33 = vpop.eup %3340  ;;  %v1666_v17 = vpop.xlane.xlu1 %1665  ;;  %v1893_v31 = vpack.c.bf16 %v3339_v21, %v3335_v63 }
 0x54d   : > { %v1733_v38 = vsub.f32 %v4741_v37, %v1666_v17  ;;  %v1734_v32 = vsub.f32 %v4742_v15, %v1666_v17  ;;  %v1894_v13 = vpack.c.bf16 %v3341_v33, %v3337_v9  ;;  %3350 = vpow2.f32 %v1847_v60  ;;  %v2060_v9 = vld [vmem:[%s4652_s2 + $0x1a8] sm:$0xff]  ;;  %v2007_v37 = vld [vmem:[%s4652_s2] sm:$0xff]  ;;  %v2009_v15 = vld [vmem:[%s4652_s2 + $0x10] sm:$0xff] }
 0x54e   : > { %3352 = vpow2.f32 %v1849_v41  ;;  %v2974_v17 = vpack.c.bf16 %v2011_v42, %v2008_v35  ;;  %v2033_v35 = vld [vmem:[%s4652_s2 + $0xd0] sm:$0xff]  ;;  %v2036_v42 = vld [vmem:[%s4652_s2 + $0xe8] sm:$0xff] }
 0x54f   : > { %v1851_v44 = vmul.f32 1.442695, %v1733_v38  ;;  %v1853_v57 = vmul.f32 1.442695, %v1734_v32  ;;  %1925 = vmatprep.subr.bf16.mxu1 %v1894_v13  ;;  %1968 = vmatprep.subr.bf16.mxu0 %v1894_v13  ;;  %v3343_v56 = vpop.eup %3342  ;;  %v2010_v38 = vld [vmem:[%s4652_s2 + $0x18] sm:$0xff]  ;;  %v2012_v32 = vld [vmem:[%s4652_s2 + $0x28] sm:$0xff] }
 0x550   : > { %1926 = vmatpush1.bf16.xpose.msra.mxu1 %v1893_v31  ;;  %1969 = vmatpush1.bf16.xpose.msra.mxu0 %v1893_v31  ;;  %v1669_v22 = vpop.xlane.xlu0 %1668  ;;  %v3345_v48 = vpop.eup %3344  ;;  %v3038_v31 = vpack.c.bf16 %v2060_v9, %v2057_v58  ;;  %v2014_v13 = vld [vmem:[%s4652_s2 + $0x38] sm:$0xff]  ;;  %v2041_v9 = vld [vmem:[%s4652_s2 + $0x110] sm:$0xff] }
 0x551   : > { %3354 = vpow2.f32 %v1851_v44  ;;  %v1735_v7 = vsub.f32 %v4743_v20, %v1669_v22  ;;  %v1736_v27 = vsub.f32 %v4744_v10, %v1669_v22  ;;  %v2017_v44 = vld [vmem:[%s4652_s2 + $0x50] sm:$0xff]  ;;  %v2066_v22 = vld [vmem:[%s4652_s2 + $0x1d8] sm:$0xff]  ;;  %v3040_v10 = vpack.c.bf16 %v2012_v32, %v2009_v15 }
 0x552   : > { %3356 = vpow2.f32 %v1853_v57  ;;  %v2063_v57 = vld [vmem:[%s4652_s2 + $0x1c0] sm:$0xff]  ;;  %v4750_v20 = vld [vmem:[#allocation7_spill] sm:$0xff]  ;;  %v2038_v58 = vld [vmem:[%s4652_s2 + $0xf8] sm:$0xff] }
 0x553   : > { %v3347_v52 = vpop.eup %3346  ;;  %v1855_v55 = vmul.f32 1.442695, %v1735_v7  ;;  %v1857_v47 = vmul.f32 1.442695, %v1736_v27  ;;  %v1944_v7 = vpack.c.bf16 %v4750_v20, %v4750_v20  ;;  %v2013_v27 = vld [vmem:[%s4652_s2 + $0x30] sm:$0xff]  ;;  %v2042_v32 = vld [vmem:[%s4652_s2 + $0x118] sm:$0xff] }
 0x554   : > { %v3349_v0 = vpop.eup %3348  ;;  %v1672_v12 = vpop.xlane.xlu1 %1671  ;;  %v1895_v49 = vpack.c.bf16 %v3347_v52, %v3343_v56  ;;  %v2976_v56 = vpack.c.bf16 %v2010_v38, %v2007_v37  ;;  %v2015_v52 = vld [vmem:[%s4652_s2 + $0x40] sm:$0xff]  ;;  %v2040_v37 = vld [vmem:[%s4652_s2 + $0x108] sm:$0xff] }
 0x555   : > { %v1737_v43 = vsub.f32 %v4745_v5, %v1672_v12  ;;  %v1738_v36 = vsub.f32 %v4746_v46, %v1672_v12  ;;  %v1896_v50 = vpack.c.bf16 %v3349_v0, %v3345_v48  ;;  %3358 = vpow2.f32 %v1855_v55  ;;  %v2016_v48 = vld [vmem:[%s4652_s2 + $0x48] sm:$0xff]  ;;  %v2039_v38 = vld [vmem:[%s4652_s2 + $0x100] sm:$0xff] }
 0x556   : > { %3360 = vpow2.f32 %v1857_v47  ;;  %v2978_v55 = vpack.c.bf16 %v2017_v44, %v2014_v13  ;;  %v3042_v0 = vpack.c.bf16 %v2066_v22, %v2063_v57  ;;  %v2018_v47 = vld [vmem:[%s4652_s2 + $0x58] sm:$0xff]  ;;  %v2020_v12 = vld [vmem:[%s4652_s2 + $0x68] sm:$0xff]  ;;  %v4751_v5 = vmov 1065369472   ;;  %v2047_v44 = vld [vmem:[%s4652_s2 + $0x140] sm:$0xff] }
 0x557   : > { %v1859_v39 = vmul.f32 1.442695, %v1737_v43  ;;  %v1861_v11 = vmul.f32 1.442695, %v1738_v36  ;;  %1927 = vmatprep.subr.bf16.mxu1 %v1896_v50  ;;  %1970 = vmatprep.subr.bf16.mxu0 %v1896_v50  ;;  %v3351_v24 = vpop.eup %3350  ;;  %v2069_v43 = vld [vmem:[%s4652_s2 + $0x1f0] sm:$0xff]  ;;  %v2072_v46 = vld [vmem:[%s4652_s2 + $0x208] sm:$0xff]  ;;  %v2980_v50 = vpack.c.bf16 %v2016_v48, %v2013_v27  ;;  %v3060_v20 = vpack.c.bf16 %v2042_v32, %v2039_v38 }
 0x558   : > { %1928 = vmatpush1.bf16.xpose.msra.mxu1 %v1895_v49  ;;  %1971 = vmatpush1.bf16.xpose.msra.mxu0 %v1895_v49  ;;  %v1675_v25 = vpop.xlane.xlu0 %1674  ;;  %v3353_v8 = vpop.eup %3352  ;;  %v2023_v49 = vld [vmem:[%s4652_s2 + $0x80] sm:$0xff]  ;;  %v3396_v36 = vld [vmem:[#allocation2 + $0x8] sm:$0xff]  ;;  %v2093_v57 = vld [vmem:[%s4652_s2 + $0x2b0] sm:$0xff] }
 0x559   : > { %3362 = vpow2.f32 %v1859_v39  ;;  %v1739_v16 = vsub.f32 %v4747_v30, %v1675_v25  ;;  %v1740_v59 = vsub.f32 %v4748_v18, %v1675_v25  ;;  %v3044_v39 = vpack.c.bf16 %v2018_v47, %v2015_v52  ;;  %v2019_v25 = vld [vmem:[%s4652_s2 + $0x60] sm:$0xff]  ;;  %v2021_v30 = vld [vmem:[%s4652_s2 + $0x70] sm:$0xff]  ;;  %v2024_v18 = vld [vmem:[%s4652_s2 + $0x88] sm:$0xff] }
 0x55a   : > { %3364 = vpow2.f32 %v1861_v11  ;;  %v2982_v11 = vpack.c.bf16 %v2023_v49, %v2020_v12  ;;  %v2044_v13 = vld [vmem:[%s4652_s2 + $0x128] sm:$0xff]  ;;  %v2046_v27 = vld [vmem:[%s4652_s2 + $0x138] sm:$0xff]  ;;  %v2045_v48 = vld [vmem:[%s4652_s2 + $0x130] sm:$0xff] }
 0x55b   : > { %v3355_v34 = vpop.eup %3354  ;;  %v1863_v3 = vmul.f32 1.442695, %v1739_v16  ;;  %v1865_v61 = vmul.f32 1.442695, %v1740_v59  ;;  %v3046_v16 = vpack.c.bf16 %v2072_v46, %v2069_v43  ;;  %v2026_v59 = vld [vmem:[%s4652_s2 + $0x98] sm:$0xff]  ;;  %v2096_v22 = vld [vmem:[%s4652_s2 + $0x2c8] sm:$0xff] }
 0x55c   : > { %v3357_v45 = vpop.eup %3356  ;;  %v1678_v51 = vpop.xlane.xlu1 %1677  ;;  %v1897_v19 = vpack.c.bf16 %v3355_v34, %v3351_v24  ;;  %v2022_v24 = vld [vmem:[%s4652_s2 + $0x78] sm:$0xff]  ;;  %v2075_v34 = vld [vmem:[%s4652_s2 + $0x220] sm:$0xff]  ;;  %v3062_v52 = vpack.c.bf16 %v2096_v22, %v2093_v57  ;;  %v2053_v47 = vld [vmem:[%s4652_s2 + $0x170] sm:$0xff] }
 0x55d   : > { %v1741_v40 = vsub.f32 %v4169_v26, %v1678_v51  ;;  %v1742_v1 = vsub.f32 %v4749_v29, %v1678_v51  ;;  %v1898_v28 = vpack.c.bf16 %v3357_v45, %v3353_v8  ;;  %3366 = vpow2.f32 %v1863_v3  ;;  %v2029_v8 = vld [vmem:[%s4652_s2 + $0xb0] sm:$0xff]  ;;  %v2078_v3 = vld [vmem:[%s4652_s2 + $0x238] sm:$0xff]  ;;  %v2027_v29 = vld [vmem:[%s4652_s2 + $0xa0] sm:$0xff] }
 0x55e   : > { %3368 = vpow2.f32 %v1865_v61  ;;  %v2984_v45 = vpack.c.bf16 %v2022_v24, %v2019_v25  ;;  %v3048_v61 = vpack.c.bf16 %v2024_v18, %v2021_v30  ;;  %v2986_v51 = vpack.c.bf16 %v2029_v8, %v2026_v59  ;;  %v2099_v12 = vld [vmem:[%s4652_s2 + $0x2e0] sm:$0xff]  ;;  %v2102_v49 = vld [vmem:[%s4652_s2 + $0x2f8] sm:$0xff]  ;;  %v2056_v30 = vld [vmem:[%s4652_s2 + $0x188] sm:$0xff] }
 0x55f   : > { %v1867_v54 = vmul.f32 1.442695, %v1741_v40  ;;  %v1869_v4 = vmul.f32 1.442695, %v1742_v1  ;;  %1929 = vmatprep.subr.bf16.mxu1 %v1898_v28  ;;  %1972 = vmatprep.subr.bf16.mxu0 %v1898_v28  ;;  %v3359_v2 = vpop.eup %3358  ;;  %v2028_v40 = vld [vmem:[%s4652_s2 + $0xa8] sm:$0xff]  ;;  %v3050_v1 = vpack.c.bf16 %v2078_v3, %v2075_v34  ;;  %v2030_v28 = vld [vmem:[%s4652_s2 + $0xb8] sm:$0xff]  ;;  %v3066_v25 = vpack.c.bf16 %v2102_v49, %v2099_v12 }
 0x560   : > { %1930 = vmatpush1.bf16.xpose.msra.mxu1 %v1897_v19  ;;  %1973 = vmatpush1.bf16.xpose.msra.mxu0 %v1897_v19  ;;  %v3361_v6 = vpop.eup %3360  ;;  %v2025_v19 = vld [vmem:[%s4652_s2 + $0x90] sm:$0xff]  ;;  %v2054_v24 = vld [vmem:[%s4652_s2 + $0x178] sm:$0xff]  ;;  %v2055_v34 = vld [vmem:[%s4652_s2 + $0x180] sm:$0xff] }
 0x561   : > { %3370 = vpow2.f32 %v1867_v54  ;;  %v2032_v54 = vld [vmem:[%s4652_s2 + $0xc8] sm:$0xff]  ;;  %v2058_v3 = vld [vmem:[%s4652_s2 + $0x198] sm:$0xff] }
 0x562   : > { %3372 = vpow2.f32 %v1869_v4  ;;  %v2035_v4 = vld [vmem:[%s4652_s2 + $0xe0] sm:$0xff]  ;;  %v2088_v32 = vld [vmem:[%s4652_s2 + $0x288] sm:$0xff] }
 0x563   : > { %v3363_v23 = vpop.eup %3362 }
 0x564   : > { %v3365_v53 = vpop.eup %3364  ;;  %v1899_v62 = vpack.c.bf16 %v3363_v23, %v3359_v2  ;;  %v2081_v2 = vld [vmem:[%s4652_s2 + $0x250] sm:$0xff]  ;;  %v2988_v23 = vpack.c.bf16 %v2028_v40, %v2025_v19 }
 0x565   : > { %v1900_v63 = vpack.c.bf16 %v3365_v53, %v3361_v6  ;;  %v2084_v6 = vld [vmem:[%s4652_s2 + $0x268] sm:$0xff]  ;;  %v3052_v53 = vpack.c.bf16 %v2030_v28, %v2027_v29  ;;  %v2061_v40 = vld [vmem:[%s4652_s2 + $0x1b0] sm:$0xff]  ;;  %v2071_v28 = vld [vmem:[%s4652_s2 + $0x200] sm:$0xff] }
 0x566   : > { %v2064_v29 = vld [vmem:[%s4652_s2 + $0x1c8] sm:$0xff] }
 0x567   : > { %1931 = vmatprep.subr.bf16.mxu1 %v1900_v63  ;;  %1974 = vmatprep.subr.bf16.mxu0 %v1900_v63  ;;  %v3367_v26 = vpop.eup %3366  ;;  %v2031_v63 = vld [vmem:[%s4652_s2 + $0xc0] sm:$0xff] }
 0x568   : > { %1932 = vmatpush1.bf16.xpose.msra.mxu1 %v1899_v62  ;;  %1975 = vmatpush1.bf16.xpose.msra.mxu0 %v1899_v62  ;;  %v3369_v14 = vpop.eup %3368  ;;  %v2990_v62 = vpack.c.bf16 %v2035_v4, %v2032_v54  ;;  %v4752_v54 = vmov 0.0   ;;  %v2003_v4 = vld [vmem:[#allocation2] sm:$0xff] }
 0x56b   : > { %v3371_v21 = vpop.eup %3370 }
 0x56c   : > { %v3373_v60 = vpop.eup %3372  ;;  %v1901_v33 = vpack.c.bf16 %v3371_v21, %v3367_v26  ;;  %v2034_v26 = vld [vmem:[%s4652_s2 + $0xd8] sm:$0xff]  ;;  %v2087_v21 = vld [vmem:[%s4652_s2 + $0x280] sm:$0xff] }
 0x56d   : > { %v1902_v41 = vpack.c.bf16 %v3373_v60, %v3369_v14  ;;  %v3054_v14 = vpack.c.bf16 %v2084_v6, %v2081_v2  ;;  %v2090_v60 = vld [vmem:[%s4652_s2 + $0x298] sm:$0xff]  ;;  %v3012_v2 = vpack.c.bf16 %v2064_v29, %v2061_v40 }
 0x56e   : > { %v3058_v15 = vpack.c.bf16 %v2090_v60, %v2087_v21 }
 0x56f   : > { %1933 = vmatprep.subr.bf16.mxu1 %v1902_v41  ;;  %1976 = vmatprep.subr.bf16.mxu0 %v1902_v41  ;;  %v3056_v41 = vpack.c.bf16 %v2036_v42, %v2033_v35  ;;  %v2076_v42 = vld [vmem:[%s4652_s2 + $0x228] sm:$0xff] }
 0x570   : > { %1934 = vmatpush1.bf16.xpose.msra.mxu1 %v1901_v33  ;;  %1977 = vmatpush1.bf16.xpose.msra.mxu0 %v1901_v33  ;;  %v2992_v33 = vpack.c.bf16 %v2034_v26, %v2031_v63  ;;  %v2077_v63 = vld [vmem:[%s4652_s2 + $0x230] sm:$0xff] }
 0x571   : > { %2975 = vmatprep.subr.bf16.mxu1 %v2974_v17  ;;  %3039 = vmatprep.subr.bf16.mxu0 %v3038_v31  ;;  %v2994_v17 = vpack.c.bf16 %v2041_v9, %v2038_v58  ;;  %v2037_v31 = vld [vmem:[%s4652_s2 + $0xf0] sm:$0xff]  ;;  %v2080_v58 = vld [vmem:[%s4652_s2 + $0x248] sm:$0xff]  ;;  %v2083_v9 = vld [vmem:[%s4652_s2 + $0x260] sm:$0xff] }
 0x572   : > { %v3022_v60 = vpack.c.bf16 %v2083_v9, %v2080_v58 }
 0x577   : > { %1936 = vmatmul.mubr.bf16.vlgmr.msra.gmra.mrb[68].mxu1 %v4751_v5  ;;  %1979 = vmatmul.mubr.bf16.vlgmr.msra.gmra.mrb[80].mxu0 %v1944_v7  ;;  %v2998_v7 = vpack.c.bf16 %v2047_v44, %v2044_v13  ;;  %v2092_v13 = vld [vmem:[%s4652_s2 + $0x2a8] sm:$0xff]  ;;  %v2095_v44 = vld [vmem:[%s4652_s2 + $0x2c0] sm:$0xff] }
 0x578   : > { %2977 = vmatpush1.bf16.msra.mxu1 %v2976_v56  ;;  %2167 = vmatprep.mubr.f32.mxu1 %v3396_v36  ;;  %v2996_v56 = vpack.c.bf16 %v2040_v37, %v2037_v31  ;;  %v2089_v31 = vld [vmem:[%s4652_s2 + $0x290] sm:$0xff]  ;;  %v3030_v22 = vpack.c.bf16 %v2095_v44, %v2092_v13 }
 0x579   : > { %3041 = vmatpush3.bf16.msra.mxu0 %v3040_v10  ;;  %2243 = vmatprep.mubr.f32.mxu0 %v3396_v36  ;;  %v2043_v10 = vld [vmem:[%s4652_s2 + $0x120] sm:$0xff] }
 0x57a   : > { %2979 = vmatprep.subr.bf16.mxu1 %v2978_v55  ;;  %3043 = vmatprep.subr.bf16.mxu0 %v3042_v0  ;;  %v2048_v55 = vld [vmem:[%s4652_s2 + $0x148] sm:$0xff]  ;;  %v2050_v0 = vld [vmem:[%s4652_s2 + $0x158] sm:$0xff]  ;;  %v3000_v43 = vpack.c.bf16 %v2046_v27, %v2043_v10  ;;  %v2101_v10 = vld [vmem:[%s4652_s2 + $0x2f0] sm:$0xff] }
 0x57b   : > { %v3064_v46 = vpack.c.bf16 %v2048_v55, %v2045_v48  ;;  %v3002_v36 = vpack.c.bf16 %v2053_v47, %v2050_v0  ;;  %v2100_v55 = vld [vmem:[%s4652_s2 + $0x2e8] sm:$0xff] }
 0x57c   : > { %2981 = vmatpush1.bf16.msra.mxu1 %v2980_v50  ;;  %v2049_v50 = vld [vmem:[%s4652_s2 + $0x150] sm:$0xff] }
 0x57d   : > { %3045 = vmatpush3.bf16.msra.mxu0 %v3044_v39  ;;  %2983 = vmatprep.subr.bf16.mxu1 %v2982_v11  ;;  %v2052_v39 = vld [vmem:[%s4652_s2 + $0x168] sm:$0xff]  ;;  %v2051_v11 = vld [vmem:[%s4652_s2 + $0x160] sm:$0xff] }
 0x57e   : > { %3047 = vmatprep.subr.bf16.mxu0 %v3046_v16  ;;  %v2059_v16 = vld [vmem:[%s4652_s2 + $0x1a0] sm:$0xff]  ;;  %v3004_v18 = vpack.c.bf16 %v2052_v39, %v2049_v50  ;;  %v3068_v59 = vpack.c.bf16 %v2054_v24, %v2051_v11  ;;  %v4753_v24 = vld [vmem:[#allocation8_spill] sm:$0xff] }
 0x57f   : > { %v3006_v8 = vpack.c.bf16 %v2059_v16, %v2056_v30 }
 0x580   : > { %2985 = vmatpush1.bf16.msra.mxu1 %v2984_v45  ;;  %v2062_v45 = vld [vmem:[%s4652_s2 + $0x1b8] sm:$0xff] }
 0x581   : > { %3049 = vmatpush3.bf16.msra.mxu0 %v3048_v61  ;;  %2987 = vmatprep.subr.bf16.mxu1 %v2986_v51  ;;  %v2065_v61 = vld [vmem:[%s4652_s2 + $0x1d0] sm:$0xff]  ;;  %v3008_v51 = vpack.c.bf16 %v2058_v3, %v2055_v34 }
 0x582   : > { %3051 = vmatprep.subr.bf16.mxu0 %v3050_v1  ;;  %v3010_v19 = vpack.c.bf16 %v2065_v61, %v2062_v45  ;;  %v2068_v1 = vld [vmem:[%s4652_s2 + $0x1e8] sm:$0xff] }
 0x583   : > { %v3014_v6 = vpack.c.bf16 %v2071_v28, %v2068_v1 }
 0x584   : > { %2989 = vmatpush1.bf16.msra.mxu1 %v2988_v23  ;;  %v2067_v23 = vld [vmem:[%s4652_s2 + $0x1e0] sm:$0xff] }
 0x585   : > { %3053 = vmatpush3.bf16.msra.mxu0 %v3052_v53  ;;  %2991 = vmatprep.subr.bf16.mxu1 %v2990_v62  ;;  %v2070_v53 = vld [vmem:[%s4652_s2 + $0x1f8] sm:$0xff] }
 0x586   : > { %3055 = vmatprep.subr.bf16.mxu0 %v3054_v14  ;;  %v2074_v62 = vld [vmem:[%s4652_s2 + $0x218] sm:$0xff]  ;;  %v3016_v26 = vpack.c.bf16 %v2070_v53, %v2067_v23  ;;  %v2073_v14 = vld [vmem:[%s4652_s2 + $0x210] sm:$0xff] }
 0x587   : > { %v3018_v35 = vpack.c.bf16 %v2077_v63, %v2074_v62  ;;  %v3020_v21 = vpack.c.bf16 %v2076_v42, %v2073_v14  ;;  %v2267_v23 = vld [vmem:[%s4651_s1 + $0x10] sm:$0xff] }
 0x588   : > { %2993 = vmatpush1.bf16.msra.mxu1 %v2992_v33  ;;  %v2079_v33 = vld [vmem:[%s4652_s2 + $0x240] sm:$0xff] }
 0x589   : > { %3057 = vmatpush3.bf16.msra.mxu0 %v3056_v41  ;;  %2995 = vmatprep.subr.bf16.mxu1 %v2994_v17  ;;  %v2082_v41 = vld [vmem:[%s4652_s2 + $0x258] sm:$0xff] }
 0x58a   : > { %3059 = vmatprep.subr.bf16.mxu0 %v3058_v15  ;;  %v2086_v17 = vld [vmem:[%s4652_s2 + $0x278] sm:$0xff]  ;;  %v3024_v37 = vpack.c.bf16 %v2082_v41, %v2079_v33  ;;  %v2085_v15 = vld [vmem:[%s4652_s2 + $0x270] sm:$0xff] }
 0x58b   : > { %v3026_v38 = vpack.c.bf16 %v2089_v31, %v2086_v17  ;;  %v3028_v57 = vpack.c.bf16 %v2088_v32, %v2085_v15 }
 0x58c   : > { %2997 = vmatpush1.bf16.msra.mxu1 %v2996_v56  ;;  %v2091_v56 = vld [vmem:[%s4652_s2 + $0x2a0] sm:$0xff] }
 0x58d   : > { %3061 = vmatpush3.bf16.msra.mxu0 %v3060_v20  ;;  %2999 = vmatprep.subr.bf16.mxu1 %v2998_v7  ;;  %v2094_v20 = vld [vmem:[%s4652_s2 + $0x2b8] sm:$0xff] }
 0x58e   : > { %3063 = vmatprep.subr.bf16.mxu0 %v3062_v52  ;;  %v2098_v7 = vld [vmem:[%s4652_s2 + $0x2d8] sm:$0xff]  ;;  %v3032_v27 = vpack.c.bf16 %v2094_v20, %v2091_v56  ;;  %v2097_v52 = vld [vmem:[%s4652_s2 + $0x2d0] sm:$0xff] }
 0x58f   : > { %v3034_v48 = vpack.c.bf16 %v2101_v10, %v2098_v7  ;;  %v3036_v0 = vpack.c.bf16 %v2100_v55, %v2097_v52 }
 0x590   : > { %3001 = vmatpush1.bf16.msra.mxu1 %v3000_v43 }
 0x591   : > { %3065 = vmatpush3.bf16.msra.mxu0 %v3064_v46  ;;  %3003 = vmatprep.subr.bf16.mxu1 %v3002_v36 }
 0x592   : > { %3067 = vmatprep.subr.bf16.mxu0 %v3066_v25 }
 0x594   : > { %3005 = vmatpush1.bf16.msra.mxu1 %v3004_v18 }
 0x595   : > { %3069 = vmatpush3.bf16.msra.mxu0 %v3068_v59  ;;  %3007 = vmatprep.subr.bf16.mxu1 %v3006_v8 }
 0x596   : > { %2925 = vmatprep.subr.mxu0 %v4752_v54 }
 0x598   : > { %2244 = vmatmul.mubr.f32.vlgmr.msra.gmra.mrb[84].mxu0 %v2003_v4  ;;  %3009 = vmatpush1.bf16.msra.mxu1 %v3008_v51  ;;  %v2265_v51 = vld [vmem:[%s4651_s1] sm:$0xff] }
 0x599   : > { %3011 = vmatprep.subr.bf16.mxu1 %v3010_v19  ;;  %v2266_v19 = vld [vmem:[%s4651_s1 + $0x8] sm:$0xff] }
 0x59c   : > { %3013 = vmatpush1.bf16.msra.mxu1 %v3012_v2 }
 0x59d   : > { %3015 = vmatprep.subr.bf16.mxu1 %v3014_v6 }
 0x5a0   : > { %3017 = vmatpush1.bf16.msra.mxu1 %v3016_v26 }
 0x5a1   : > { %3019 = vmatprep.subr.bf16.mxu1 %v3018_v35 }
 0x5a4   : > { %3021 = vmatpush1.bf16.msra.mxu1 %v3020_v21 }
 0x5a5   : > { %3023 = vmatprep.subr.bf16.mxu1 %v3022_v60 }
 0x5a8   : > { %3025 = vmatpush1.bf16.msra.mxu1 %v3024_v37 }
 0x5a9   : > { %3027 = vmatprep.subr.bf16.mxu1 %v3026_v38 }
 0x5ac   : > { %3029 = vmatpush1.bf16.msra.mxu1 %v3028_v57 }
 0x5ad   : > { %3031 = vmatprep.subr.bf16.mxu1 %v3030_v22 }
 0x5b0   : > { %3033 = vmatpush1.bf16.msra.mxu1 %v3032_v27 }
 0x5b1   : > { %3035 = vmatprep.subr.bf16.mxu1 %v3034_v48 }
 0x5b4   : > { %3037 = vmatpush1.bf16.msra.mxu1 %v3036_v0 }
 0x5b5   : > { %2962 = vmatprep.subr.bf16.mxu1 %v4752_v54 }
 0x5b7   : > { %2168 = vmatmul.mubr.f32.vlgmr.msra.gmra.mrb[72].mxu1 %v2003_v4 }
 0x64a   : > { %v1937_v47 = vpop.f32.mrb[68].mxu1  ;;  %v1980_v12 = vpop.f32.mrb[80].mxu0 }
 0x64b   : > { %3374 = vrcp.f32 %v1937_v47  ;;  %v1939_v49 = vpop.f32.mrb[69].mxu1  ;;  %v1982_v43 = vpop.f32.mrb[81].mxu0 }
 0x64c   : > { %3376 = vrcp.f32 %v1939_v49  ;;  %v1941_v46 = vpop.f32.mrb[70].mxu1  ;;  %v1984_v36 = vpop.f32.mrb[82].mxu0 }
 0x64d   : > { %v1942_v50 = vpop.f32.mrb[71].mxu1  ;;  %v1985_v39 = vpop.f32.mrb[83].mxu0 }
 0x655   : > { %v3375_v11 = vpop.eup %3374 }
 0x656   : > { %v3377_v25 = vpop.eup %3376  ;;  %v1992_v30 = vrot.slane %v3375_v11, %v4753_v24 }
 0x657   : > { %v1996_v16 = vrot.slane %v3377_v25, %v4753_v24 }
 0x658   : > { %v1997_v18 = vmul.f32 %v1992_v30, %v1980_v12 }
 0x659   : > { %v1998_v59 = vmul.f32 %v1996_v16, %v1982_v43 }
 0x65b   : > { %2172 = vmatprep.mubr.f32.mxu1 %v1998_v59  ;;  %2247 = vmatprep.mubr.f32.mxu0 %v1998_v59 }
 0x65c   : > { %2173 = vmatmul.mubr.f32.gmra.mrb[74].mxu1 %v1997_v18  ;;  %2248 = vmatmul.mubr.f32.gmra.mrb[86].mxu0 %v1997_v18 }
 0x65d   : > { %2927 = vmatprep.mubr.msk.f32.mxu0 %vm3463_vm3, %v4752_v54  ;;  %2970 = vmatprep.mubr.msk.bf16.mxu1 %vm3463_vm3, %v4752_v54 }
 0x66b   : > { %v2896_v8 = vpop.f32.mrb[84].mxu0 }
 0x66c   : > { %v2897_v34 = vpop.f32.mrb[85].mxu0 }
 0x68a   : > { %v2169_v3 = vpop.f32.mrb[72].mxu1 }
 0x68b   : > { %v2253_v45 = vmax.f32 %v2169_v3, 0.0  ;;  %v2171_v61 = vpop.f32.mrb[73].mxu1 }
 0x68d   : > { %2926 = vmatpush3.msra.mxu0 %v2253_v45 }
 0x68e   : > { %2928 = vmatmul.mubr.msk.f32.vlgmr.msra.gmra.mrb[88].mxu0 %vm396_vm2, %v2265_v51 }
 0x68f   : > { %2930 = vmatprep.mubr.msk.f32.mxu0 %vm3463_vm3, %v4752_v54 }
 0x692   : > { %2931 = vmatmul.mubr.msk.f32.gmra.mrb[90].mxu0 %vm396_vm2, %v2266_v19 }
 0x693   : > { %2933 = vmatprep.mubr.msk.f32.mxu0 %vm3463_vm3, %v4752_v54 }
 0x696   : > { %2934 = vmatmul.mubr.msk.f32.gmra.mrb[92].mxu0 %vm396_vm2, %v2267_v23 }
 0x72f   : > { %v4550_v40 = vpop.f32.mrb[74].mxu1  ;;  %v2899_v29 = vpop.f32.mrb[86].mxu0 }
 0x730   : > { %v4552_v1 = vpop.f32.mrb[75].mxu1  ;;  %v2900_v28 = vpop.f32.mrb[87].mxu0 }
 0x731   : > { %v2901_v4 = vadd.f32 %v2900_v28, %v2899_v29 }
 0x761   : > { %v2343_v2 = vpop.f32.mrb[88].mxu0 }
 0x762   : > { %2357 = vxpose.xlu0.b32.start.end [1/1] (short) (narrow) %v2343_v2, 64  ;;  %v2929_v6 = vpop.f32.mrb[89].mxu0 }
 0x765   : > { %v2348_v53 = vpop.f32.mrb[90].mxu0 }
 0x766   : > { %v2932_v62 = vpop.f32.mrb[91].mxu0  ;;  %2936 = vmatprep.subr.mxu0 %v2348_v53 }
 0x767   : > { %2937 = vmatpush3.msra.mxu0 %v2348_v53 }
 0x768   : > { %2950 = vmatprep.subr.bf16.mxu0 %v4752_v54 }
 0x769   : > { %v4570_v60 = vpop.f32.mrb[92].mxu0 }
 0x76a   : > { %v2935_v33 = vpop.f32.mrb[93].mxu0 }
 0x7a7   : > { %2261 = vrot.lane.b32.xlu0 %v2901_v4, %s3464_s12 }
 0x7e2   : > { %v2373_v63 = vpop.trf.xlu0 }
 0x7e3   : > { %2938 = vmatprep.mubr.msk.f32.mxu0 %vm396_vm2, %v2373_v63 }
 0x7e6   : > { %v2374_v26 = vpop.trf.xlu0 }
 0x7e7   : > { %2939 = vmatmul.mubr.msk.f32.vlgmr.msra.gmra.mrb[94].mxu0 %vm396_vm2, %v2374_v26 }
 0x7ea   : > { %v2375_v35 = vpop.trf.xlu0 }
 0x7eb   : > { %2941 = vmatprep.mubr.msk.f32.mxu0 %vm396_vm2, %v2375_v35 }
 0x7ee   : > { %v2376_v14 = vpop.trf.xlu0 }
 0x7ef   : > { %2942 = vmatmul.mubr.msk.f32.gmra.mrb[96].mxu0 %vm396_vm2, %v2376_v14 }
 0x7f2   : > { %v2377_v42 = vpop.trf.xlu0 }
 0x7f3   : > { %2944 = vmatprep.mubr.msk.f32.mxu0 %vm396_vm2, %v2377_v42 }
 0x7f6   : > { %v2378_v58 = vpop.trf.xlu0 }
 0x7f7   : > { %2945 = vmatmul.mubr.msk.f32.gmra.mrb[98].mxu0 %vm396_vm2, %v2378_v58 }
 0x7fa   : > { %v2379_v9 = vpop.trf.xlu0 }
 0x7fb   : > { %2947 = vmatprep.mubr.msk.f32.mxu0 %vm396_vm2, %v2379_v9 }
 0x7fe   : > { %v2380_v21 = vpop.trf.xlu0 }
 0x7ff   : > { %2948 = vmatmul.mubr.msk.f32.gmra.mrb[100].mxu0 %vm396_vm2, %v2380_v21 }
 0x800   : > { %2958 = vmatprep.mubr.msk.bf16.mxu0 %vm3463_vm3, %v4752_v54 }
 0x819   : > { %v2262_v58 = vpop.permute.xlu0 %2261 }
 0x8ba   : > { %v2940_v41 = vpop.f32.mrb[94].mxu0 }
 0x8bb   : > { %v2522_v17 = vsel %vm2518_vm4, %v2940_v41, -inf  ;;  %v2479_v31 = vpop.f32.mrb[95].mxu0 }
 0x8bc   : > { %2523 = vmax.xlane.f32.xlu1 %v2522_v17  ;;  %v2519_v37 = vsel %vm2518_vm4, %v2479_v31, -inf }
 0x8c0   : > { %2520 = vmax.xlane.f32.xlu1 %v2519_v37 }
 0x8c2   : > { %v2943_v38 = vpop.f32.mrb[96].mxu0 }
 0x8c3   : > { %v2528_v15 = vsel %vm2518_vm4, %v2943_v38, -inf  ;;  %v2489_v32 = vpop.f32.mrb[97].mxu0 }
 0x8c4   : > { %2529 = vmax.xlane.f32.xlu1 %v2528_v15  ;;  %v2525_v13 = vsel %vm2518_vm4, %v2489_v32, -inf }
 0x8c8   : > { %2526 = vmax.xlane.f32.xlu1 %v2525_v13 }
 0x8ca   : > { %v2946_v44 = vpop.f32.mrb[98].mxu0 }
 0x8cb   : > { %v2534_v57 = vsel %vm2518_vm4, %v2946_v44, -inf  ;;  %v2499_v22 = vpop.f32.mrb[99].mxu0 }
 0x8cc   : > { %2535 = vmax.xlane.f32.xlu1 %v2534_v57  ;;  %v2531_v56 = vsel %vm2518_vm4, %v2499_v22, -inf }
 0x8d0   : > { %2532 = vmax.xlane.f32.xlu1 %v2531_v56 }
 0x8d2   : > { %v2949_v20 = vpop.f32.mrb[100].mxu0 }
 0x8d3   : > { %v2509_v7 = vpop.f32.mrb[101].mxu0  ;;  %v2540_v27 = vsel %vm2518_vm4, %v2949_v20, -inf }
 0x8d4   : > { %v2537_v10 = vsel %vm2518_vm4, %v2509_v7, -inf }
 0x8d5   : > { %2538 = vmax.xlane.f32.xlu1 %v2537_v10 }
 0x8d9   : > { %2541 = vmax.xlane.f32.xlu1 %v2540_v27 }
 0x8ea   : > { %2255 = vrot.lane.b32.xlu1 %v4552_v1, %s3464_s12 }
 0x949   : > { %v2524_v48 = vpop.xlane.xlu1 %2523 }
 0x94a   : > { %v2544_v52 = vsub.f32 %v2940_v41, %v2524_v48 }
 0x94c   : > { %v2553_v55 = vmul.f32 1.442695, %v2544_v52 }
 0x94d   : > { %v2521_v0 = vpop.xlane.xlu1 %2520 }
 0x94e   : > { %v2543_v47 = vsub.f32 %v2479_v31, %v2521_v0  ;;  %3378 = vpow2.f32 %v2553_v55 }
 0x950   : > { %v2551_v12 = vmul.f32 1.442695, %v2543_v47 }
 0x951   : > { %v2530_v49 = vpop.xlane.xlu1 %2529 }
 0x952   : > { %3380 = vpow2.f32 %v2551_v12  ;;  %v2546_v43 = vsub.f32 %v2943_v38, %v2530_v49 }
 0x954   : > { %v2557_v46 = vmul.f32 1.442695, %v2546_v43 }
 0x955   : > { %v2527_v36 = vpop.xlane.xlu1 %2526 }
 0x956   : > { %v2545_v50 = vsub.f32 %v2489_v32, %v2527_v36  ;;  %3382 = vpow2.f32 %v2557_v46 }
 0x958   : > { %v2555_v39 = vmul.f32 1.442695, %v2545_v50  ;;  %v3379_v30 = vpop.eup %3378 }
 0x959   : > { %v2536_v11 = vpop.xlane.xlu1 %2535 }
 0x95a   : > { %3384 = vpow2.f32 %v2555_v39  ;;  %v2548_v25 = vsub.f32 %v2946_v44, %v2536_v11 }
 0x95c   : > { %v3381_v16 = vpop.eup %3380  ;;  %v2561_v18 = vmul.f32 1.442695, %v2548_v25 }
 0x95d   : > { %v2533_v59 = vpop.xlane.xlu1 %2532  ;;  %v2567_v8 = vpack.c.bf16 %v3379_v30, %v3381_v16 }
 0x95e   : > { %v2547_v34 = vsub.f32 %v2499_v22, %v2533_v59  ;;  %3386 = vpow2.f32 %v2561_v18 }
 0x95f   : > { %v2575_v3 = vsel %vm2518_vm4, %v2567_v8, 0 }
 0x960   : > { %v2559_v45 = vmul.f32 1.442695, %v2547_v34  ;;  %2951 = vmatpush3.bf16.xpose.msra.mxu0 %v2575_v3  ;;  %2963 = vmatpush3.bf16.xpose.msra.mxu1 %v2575_v3  ;;  %v3383_v51 = vpop.eup %3382 }
 0x961   : > { %2952 = vmatprep.subr.bf16.mxu0 %v4752_v54  ;;  %2964 = vmatprep.subr.bf16.mxu1 %v4752_v54 }
 0x962   : > { %3388 = vpow2.f32 %v2559_v45  ;;  %v2539_v61 = vpop.xlane.xlu1 %2538 }
 0x963   : > { %v2549_v19 = vsub.f32 %v2509_v7, %v2539_v61 }
 0x964   : > { %v3385_v29 = vpop.eup %3384 }
 0x965   : > { %v2568_v28 = vpack.c.bf16 %v3383_v51, %v3385_v29  ;;  %v2563_v4 = vmul.f32 1.442695, %v2549_v19 }
 0x966   : > { %v2542_v2 = vpop.xlane.xlu1 %2541 }
 0x967   : > { %v2550_v6 = vsub.f32 %v2949_v20, %v2542_v2  ;;  %v2578_v23 = vsel %vm2518_vm4, %v2568_v28, 0  ;;  %3390 = vpow2.f32 %v2563_v4 }
 0x968   : > { %2953 = vmatpush3.bf16.xpose.msra.mxu0 %v2578_v23  ;;  %2965 = vmatpush3.bf16.xpose.msra.mxu1 %v2578_v23  ;;  %v3387_v63 = vpop.eup %3386 }
 0x969   : > { %v2565_v53 = vmul.f32 1.442695, %v2550_v6  ;;  %2954 = vmatprep.subr.bf16.mxu0 %v4752_v54  ;;  %2966 = vmatprep.subr.bf16.mxu1 %v4752_v54 }
 0x96a   : > { %v2256_v62 = vpop.permute.xlu1 %2255 }
 0x96b   : > { %3392 = vpow2.f32 %v2565_v53  ;;  %v2258_v26 = vmax.f32 %v4550_v40, %v2256_v62 }
 0x96c   : > { %v3389_v35 = vpop.eup %3388 }
 0x96d   : > { %v2259_v14 = vmax.f32 %v2258_v26, %v4552_v1  ;;  %v2569_v42 = vpack.c.bf16 %v3387_v63, %v3389_v35  ;;  %v2626_v1 = vpack.c.bf16 %v4570_v60, %v4570_v60 }
 0x96f   : > { %v2264_v9 = vmax.f32 %v2259_v14, %v2262_v58  ;;  %v2581_v21 = vsel %vm2518_vm4, %v2569_v42, 0 }
 0x970   : > { %2955 = vmatpush3.bf16.xpose.msra.mxu0 %v2581_v21  ;;  %2967 = vmatpush3.bf16.xpose.msra.mxu1 %v2581_v21 }
 0x971   : > { %2678 = vrot.lane.b32.xlu1 %v2264_v9, %s3464_s12  ;;  %2956 = vmatprep.subr.bf16.mxu0 %v4752_v54  ;;  %v3391_v33 = vpop.eup %3390 }
 0x972   : > { %2968 = vmatprep.subr.bf16.mxu1 %v4752_v54 }
 0x975   : > { %v3393_v41 = vpop.eup %3392 }
 0x976   : > { %v2570_v17 = vpack.c.bf16 %v3393_v41, %v3391_v33 }
 0x978   : > { %v2584_v40 = vsel %vm2518_vm4, %v2570_v17, 0 }
 0x979   : > { %2957 = vmatpush3.bf16.xpose.msra.mxu0 %v2584_v40  ;;  %2969 = vmatpush3.bf16.xpose.msra.mxu1 %v2584_v40 }
 0x980   : > { %2959 = vmatmul.mubr.msk.bf16.vlgmr.msra.gmra.mrb[104].mxu0 %vm2518_vm4, %v4751_v5  ;;  %2971 = vmatmul.mubr.msk.bf16.vlgmr.msra.gmra.mrb[76].mxu1 %vm2518_vm4, %v2626_v1 }
 0x9e3   : > { %v2679_v20 = vpop.permute.xlu1 %2678 }
 0xa53   : > { %v2620_v31 = vpop.f32.mrb[104].mxu0  ;;  %v2664_v37 = vpop.f32.mrb[76].mxu1 }
 0xa54   : > { %3394 = vrcp.f32 %v2620_v31  ;;  %v2972_v54 = vpop.f32.mrb[77].mxu1  ;;  %v2960_v38 = vpop.f32.mrb[105].mxu0 }
 0xa55   : > { %v2667_v15 = vpop.f32.mrb[78].mxu1  ;;  %v2623_v32 = vpop.f32.mrb[106].mxu0 }
 0xa56   : > { %v2973_v13 = vpop.f32.mrb[79].mxu1  ;;  %v2961_v44 = vpop.f32.mrb[107].mxu0 }
 0xa5e   : > { %v3395_v57 = vpop.eup %3394 }
 0xa5f   : > { %v2674_v22 = vrot.slane %v3395_v57, %v4753_v24 }
 0xa61   : > { %v2675_v60 = vmul.f32 %v2674_v22, %v2664_v37 }
 0xa63   : > { %v2676_v56 = vmax.f32 %v2675_v60, 0.0 }
 0xa65   : > { %v2681_v5 = vadd.f32 %v2679_v20, %v2676_v56 }
 0xa67   : > { %v2682_v7 = vmax.f32 %v2681_v5, 0.0 }
 0xa69   : > { %2683 = vst.msk [vmem:[#allocation2] sm:$0xff] %vm2518_vm4, %v2682_v7 }
 0xa70   : > { %v2687_v10 = vld [vmem:[#allocation2] sm:$0xf0]  ;;  %v2684_v27 = vld [vmem:[#allocation2] sm:$0xf] }
 0xa71   : > { %2689 = vrot.lane.b32.xlu1 %v2687_v10, %s3464_s12  ;;  %2686 = vst.msk [vmem:[%s190_s20] sm:$0xf] %vm2685_vm5, %v2684_v27 }
 0xae3   : > { %v2690_v24 = vpop.permute.xlu1 %2689 }
 0xae4   : > { %2693 = vst.msk [vmem:[%s190_s20 - $0x4] sm:$0xf0] %vm2692_vm6, %v2690_v24 }
 0xae5   : > { %3410 = shalt.err (!%p3407_p3)
}
 0xae6   : > { %s3411_s8 = scalar_lea.hbm %s4608_s29, 64  ;;  %s3415_s11 = scalar_lea.hbm %s4654_s4, 128 }
 0xae7   : > { %p3412_p4 = scmp.ne.s32.totalorder %s4608_s29, %s3411_s8  ;;  %p3416_p9 = scmp.lt.u32.totalorder %s4608_s29, %s4654_s4 }
 0xae8   : > { %p3417_p10 = scmp.lt.u32.totalorder %s3415_s11, %s3411_s8  ;;  %p3419_p12 = scmp.lt.u32.totalorder %s3411_s8, %s4608_s29 }
 0xae9   : > { %p3413_p7 = pnand %p3412_p4, %p3529_p5 }
 0xaea   : > { %p3418_p11 = por %p3417_p10, %p3416_p9 }
 0xaeb   : > { %p3414_p8 = pneg %p3413_p7 }
 0xaec   : > { %p3420_p13 = por %p3419_p12, %p3418_p11 }
 0xaee   : > { %p3421_p0 = pnand %p3420_p13, %p3414_p8 }
 0xaf0   : > { %3424 = shalt.err (!%p3421_p0)
}
 0xaf1   : > { %3070 = dma.vmem_to_hbm [thread:$0]  (%p3529_p5), %s4610_s23, 64, %s4608_s29, %s2695_s30  }
 0xaf2 PF: > { %p3076_p1 = scmp.ge.s32.totalorder %s3459_s18, 2  ;;  %s2720_s14 = sand.u32 1, %s3447_s15  }
 0xaf3   : > { %s2721_s20 = scalar_lea.sflag [#allocation4], %s2720_s14 }
 0xaf4   : > { %p3073_p2 = pnand %p3076_p1, %p3533_p6 }
 0xaf6   : > { %3442 = dma.done.wait (!%p3073_p2), %s2721_s20, 64  }
 0xaf7   : > { %3444 = vsyncadd (!%p3073_p2), %s2721_s20, 4294967232  ;;  %p14_p3 = scmp.ge.s32.totalorder %s3516_s21, 4   ;;  %s4754_s15 = smov %s3451_s16 }
 0xaf8   : > { %s4755_s16 = smov %s3455_s17  ;;  %s4756_s17 = smov %s3527_s24 }
 0xaf9   : > { %s4757_s18 = smov %s3516_s21  ;;  %16 = sbr.rel (!%p14_p3) target bundleno = 3 (0x3), region = 71 }
 0xb00   :  { %2726 = vsyncpa [#allocation4], 1 }
 0xb01   :  { %2728 = vsyncpa [#allocation4 + $0x1], 1 }

</bundles_post_ra>
